<compile_context>
chip_gen: v5e
topology: v5e:2x2
jax: 0.10.0
libtpu: 0.0.40
codegen_flags: <defaults>
</compile_context>

<pallas_src>
import functools

import jax
import jax.numpy as jnp
import numpy as np
from jax.experimental import pallas as pl
from jax.experimental.pallas import tpu as pltpu

_MIB = 1024 * 1024


def _round_up(x, m):
    return (x + m - 1) // m * m


def _tpu_vmem_capacity_bytes():
    try:
        return int(pltpu.get_tpu_info().vmem_capacity_bytes)
    except Exception:
        return 128 * _MIB  # v5e/v6e default


def _vmem_limit(estimate_bytes):
    # Generation-aware cap: ~3/4 of physical VMEM (96 MiB on v5e/v6e, 48 MiB on v7x).
    cap = max(32 * _MIB, (_tpu_vmem_capacity_bytes() * 3) // 4)
    return int(min(cap, max(16 * _MIB, 2 * int(estimate_bytes))))


def _pick_tile_n(n):
    # On v7x-like parts (64 MiB VMEM, 3.2 TB/s HBM) per-grid-step overhead
    # dominates the now-narrow streams -> fewer/bigger steps.  128 MiB parts keep 256.
    base = 512 if _tpu_vmem_capacity_bytes() <= 64 * _MIB else 256
    tile_n = min(base, _round_up(n, 128))
    # Keep >= 2 row tiles when possible so the 'parallel' row axis shards across
    # both v7x TensorCores.
    while tile_n > 128 and _round_up(n, tile_n) // tile_n < 2:
        tile_n //= 2
    return tile_n


# -----------------------------------------------------------------------------
# Kernel 1: dense prepass  S = H @ W_self + b (f32),  HW = H @ W_neigh (bf16)
# -----------------------------------------------------------------------------
def _prepass_kernel(h_ref, ws_ref, wn_ref, b_ref, s_ref, hw_ref):
    h = h_ref[...]
    s_ref[...] = (jnp.dot(h, ws_ref[...], preferred_element_type=jnp.float32)
                  + b_ref[...])
    hw_ref[...] = jnp.dot(h, wn_ref[...],
                          preferred_element_type=jnp.float32).astype(hw_ref.dtype)


def sage_prepass(h_pad, w_self, w_neigh, bias, *, tile_n):
    n_pad, finp = h_pad.shape
    foutp = w_self.shape[1]
    nrt = n_pad // tile_n

    grid_spec = pltpu.PrefetchScalarGridSpec(
        num_scalar_prefetch=0,
        grid=(nrt,),
        in_specs=[
            pl.BlockSpec((tile_n, finp), lambda i: (i, 0)),    # H row tile
            pl.BlockSpec((finp, foutp), lambda i: (0, 0)),     # W_self (resident)
            pl.BlockSpec((finp, foutp), lambda i: (0, 0)),     # W_neigh (resident)
            pl.BlockSpec((1, foutp), lambda i: (0, 0)),        # bias (resident)
        ],
        out_specs=(
            pl.BlockSpec((tile_n, foutp), lambda i: (i, 0)),   # S
            pl.BlockSpec((tile_n, foutp), lambda i: (i, 0)),   # HW
        ),
    )

    h_b = tile_n * finp * h_pad.dtype.itemsize
    w_b = 2 * finp * foutp * w_self.dtype.itemsize + foutp * 4
    out_b = tile_n * foutp * (4 + 2)
    vmem_est = 2 * (h_b + out_b) + 2 * w_b

    flops = 2 * 2 * n_pad * finp * foutp
    bytes_accessed = (n_pad * finp * h_pad.dtype.itemsize + w_b
                      + n_pad * foutp * (4 + 2))

    return pl.pallas_call(
        _prepass_kernel,
        out_shape=(jax.ShapeDtypeStruct((n_pad, foutp), jnp.float32),
                   jax.ShapeDtypeStruct((n_pad, foutp), jnp.bfloat16)),
        grid_spec=grid_spec,
        compiler_params=pltpu.CompilerParams(
            dimension_semantics=("parallel",),
            vmem_limit_bytes=_vmem_limit(vmem_est)),
        cost_estimate=pl.CostEstimate(
            flops=int(flops), transcendentals=0, bytes_accessed=int(bytes_accessed)),
    )(h_pad, w_self, w_neigh, bias)


# -----------------------------------------------------------------------------
# Kernel 2: block-sparse aggregation in output-feature space + ReLU
# -----------------------------------------------------------------------------
def _sparse_agg_kernel(cols_ref, cnt_ref,              # scalar prefetch (SMEM)
                       a_ref, hw_ref, s_ref,           # inputs
                       o_ref,                          # output
                       acc_ref):                       # f32 (tile_n, foutp) accumulator
    i = pl.program_id(0)   # node row tile
    j = pl.program_id(1)   # nonzero adjacency-block slot (reduction axis)

    @pl.when(j == 0)
    def _init():
        # Self path (H @ W_self + bias), precomputed in f32 by the prepass kernel;
        # hoisted out of the finalize so it overlaps the first sparse DMAs.
        acc_ref[...] = s_ref[...]

    # Only real nonzero blocks contribute (padding slots repeat the previous
    # valid block index -> no extra DMA, and are skipped here).
    @pl.when(j < cnt_ref[i])
    def _accum():
        acc_ref[...] += jnp.dot(a_ref[...], hw_ref[...],
                                preferred_element_type=jnp.float32)

    @pl.when(j == pl.num_programs(1) - 1)
    def _finalize():
        o_ref[...] = jnp.maximum(acc_ref[...], 0.0).astype(o_ref.dtype)


def sage_sparse_agg(block_cols, block_cnt, a_pad, hw, s, *, tile_n, max_blocks,
                    nnz_blocks, buffer_depth=None, out_dtype=jnp.bfloat16):
    n_pad = a_pad.shape[0]
    foutp = hw.shape[1]
    nrt = n_pad // tile_n

    def a_map(i, j, cols, cnt):
        return (i, cols[i * max_blocks + j])

    def hw_map(i, j, cols, cnt):
        return (cols[i * max_blocks + j], 0)

    def row_map(i, j, cols, cnt):
        return (i, 0)

    if buffer_depth is None:
        a_spec = pl.BlockSpec((tile_n, tile_n), a_map)
        hw_spec = pl.BlockSpec((tile_n, foutp), hw_map)
    else:
        # Deeper pipelining on the gathered (data-dependent index) streams.
        a_spec = pl.BlockSpec((tile_n, tile_n), a_map,
                              pipeline_mode=pl.Buffered(buffer_depth))
        hw_spec = pl.BlockSpec((tile_n, foutp), hw_map,
                               pipeline_mode=pl.Buffered(buffer_depth))

    grid_spec = pltpu.PrefetchScalarGridSpec(
        num_scalar_prefetch=2,
        grid=(nrt, max_blocks),
        in_specs=[
            a_spec,                                       # A block (row tile i, nnz col block)
            hw_spec,                                      # HW rows for neighbor aggregation
            pl.BlockSpec((tile_n, foutp), row_map),       # S tile (resident over j)
        ],
        out_specs=pl.BlockSpec((tile_n, foutp), row_map),
        scratch_shapes=[pltpu.VMEM((tile_n, foutp), jnp.float32)],
    )

    depth = 2 if buffer_depth is None else buffer_depth
    a_b = tile_n * tile_n * a_pad.dtype.itemsize
    hw_b = tile_n * foutp * hw.dtype.itemsize
    s_b = tile_n * foutp * 4
    o_b = tile_n * foutp * jnp.dtype(out_dtype).itemsize
    vmem_est = depth * (a_b + hw_b) + 2 * s_b + 2 * o_b + tile_n * foutp * 4

    flops = 2 * nnz_blocks * tile_n * tile_n * foutp
    bytes_accessed = (nnz_blocks * (a_b + hw_b) + nrt * (s_b + o_b))

    return pl.pallas_call(
        _sparse_agg_kernel,
        out_shape=jax.ShapeDtypeStruct((n_pad, foutp), out_dtype),
        grid_spec=grid_spec,
        compiler_params=pltpu.CompilerParams(
            dimension_semantics=("parallel", "arbitrary"),
            vmem_limit_bytes=_vmem_limit(vmem_est)),
        cost_estimate=pl.CostEstimate(
            flops=int(flops), transcendentals=0, bytes_accessed=int(bytes_accessed)),
    )(block_cols, block_cnt, a_pad, hw, s)


def grace_forward(block_cols, block_cnt, a_pad, h_pad, params,
                  *, tile_n, max_blocks, nnz_blocks, buffer_depth=None):
    """Grace.forward(g, h): GCN encoder (stack of SAGEConv('mean') + ReLU layers)."""
    h = h_pad
    for (w_self, w_neigh, b) in params:
        s, hw = sage_prepass(h, w_self, w_neigh, b, tile_n=tile_n)
        h = sage_sparse_agg(block_cols, block_cnt, a_pad, hw, s,
                            tile_n=tile_n, max_blocks=max_blocks,
                            nnz_blocks=nnz_blocks, buffer_depth=buffer_depth)
    return h


# -----------------------------------------------------------------------------
# Host-side preparation (padding, block-sparsity table, parameters, graph)
# -----------------------------------------------------------------------------
def init_grace_params(key, in_size, hid_size, num_layers):
    """SAGEConv weights ([in, out], pre-transposed) following Grace/GCN.__init__ dims."""
    dims = [(in_size, hid_size * 2)]
    for _ in range(num_layers - 2):
        dims.append((hid_size * 2, hid_size * 2))
    dims.append((hid_size * 2, hid_size))

    params = []
    for fin, fout in dims:
        key, k1, k2 = jax.random.split(key, 3)
        scale = 1.0 / jnp.sqrt(jnp.float32(fin))
        w_self = jax.random.uniform(k1, (fin, fout), jnp.float32, -scale, scale)
        w_neigh = jax.random.uniform(k2, (fin, fout), jnp.float32, -scale, scale)
        b = jnp.zeros((fout,), jnp.float32)
        params.append((w_self, w_neigh, b))
    return params


def build_block_structure(a_mean, n_pad, tile_n):
    """Per-row-tile list of nonzero column blocks of the (padded) adjacency."""
    # TODO(synk): host-side dense N_pad x N_pad scan is O(N^2) memory; fine for the
    # demo but a CSR-driven builder is needed for very large graphs.
    n = a_mean.shape[0]
    a_np = np.zeros((n_pad, n_pad), np.float32)
    a_np[:n, :n] = np.asarray(jax.device_get(a_mean), np.float32)
    nt = n_pad // tile_n
    blocks = a_np.reshape(nt, tile_n, nt, tile_n)
    nz = np.abs(blocks).sum(axis=(1, 3)) > 0.0          # [row tile, col tile]

    cols_list, cnts = [], []
    for i in range(nt):
        idx = np.nonzero(nz[i])[0].astype(np.int32)
        cnts.append(int(idx.size))
        if idx.size == 0:
            idx = np.zeros((1,), np.int32)
        cols_list.append(idx)
    max_blocks = max(1, max(cnts))
    table = np.zeros((nt, max_blocks), np.int32)
    for i, idx in enumerate(cols_list):
        table[i, :idx.size] = idx
        table[i, idx.size:] = idx[-1]                   # repeat last valid -> no extra DMA
    nnz_blocks = int(sum(cnts))
    return (jnp.asarray(table.reshape(-1)), jnp.asarray(np.asarray(cnts, np.int32)),
            max_blocks, nnz_blocks)


def prepare_inputs(a_mean, h0, params, *, a_dtype=jnp.bfloat16):
    """Pad to TPU-friendly shapes and build the block-sparsity tables.

    Feature dims padded to multiples of 128 (lane-dense stores / full MXU width),
    node dim padded to the row tile.  A_mean stored bf16 by default (halves the A
    stream); a_dtype=jnp.float32 is honored end-to-end (the kernel no longer
    force-casts A to bf16), at the cost of 2x A bytes and an f32 matmul.
    """
    n, fin = h0.shape
    tile_n = _pick_tile_n(n)
    n_pad = _round_up(n, tile_n)
    finp = _round_up(fin, 128)

    a_pad = jnp.zeros((n_pad, n_pad), a_dtype).at[:n, :n].set(a_mean.astype(a_dtype))
    h_pad = jnp.zeros((n_pad, finp), jnp.bfloat16).at[:n, :fin].set(h0.astype(jnp.bfloat16))

    padded_params = []
    for (ws, wn, b) in params:
        fi, fo = ws.shape
        fip, fop = _round_up(fi, 128), _round_up(fo, 128)
        ws_p = jnp.zeros((fip, fop), jnp.bfloat16).at[:fi, :fo].set(ws.astype(jnp.bfloat16))
        wn_p = jnp.zeros((fip, fop), jnp.bfloat16).at[:fi, :fo].set(wn.astype(jnp.bfloat16))
        b_p = jnp.zeros((1, fop), jnp.float32).at[0, :fo].set(b)
        padded_params.append((ws_p, wn_p, b_p))

    block_cols, block_cnt, max_blocks, nnz_blocks = build_block_structure(a_mean, n_pad, tile_n)
    return (a_pad, h_pad, tuple(padded_params), block_cols, block_cnt,
            tile_n, max_blocks, nnz_blocks)


def make_ring_graph(n):
    """Deterministic undirected ring graph; returns row-normalized (mean) adjacency."""
    idx = jnp.arange(n)
    a = jnp.zeros((n, n), jnp.float32)
    a = a.at[idx, (idx + 1) % n].set(1.0)
    a = a.at[idx, (idx - 1) % n].set(1.0)
    deg = jnp.maximum(a.sum(axis=1, keepdims=True), 1.0)
    return a / deg


if __name__ == "__main__":
    N_NODES = 16
    IN_SIZE = 32
    HID_SIZE = 16
    NUM_LAYERS = 2

    key = jax.random.PRNGKey(0)
    key, k_feat = jax.random.split(key)

    h0 = jax.random.normal(k_feat, (N_NODES, IN_SIZE), jnp.float32)
    a_mean = make_ring_graph(N_NODES)
    params = init_grace_params(key, IN_SIZE, HID_SIZE, NUM_LAYERS)

    (a_pad, h_pad, params_pad, block_cols, block_cnt,
     tile_n, max_blocks, nnz_blocks) = prepare_inputs(a_mean, h0, params)

    def run(buffer_depth):
        fwd = jax.jit(functools.partial(
            grace_forward, tile_n=tile_n, max_blocks=max_blocks,
            nnz_blocks=nnz_blocks, buffer_depth=buffer_depth))
        out_pad = fwd(block_cols, block_cnt, a_pad, h_pad, params_pad)
        jax.block_until_ready(out_pad)
        return out_pad

    try:
        # Preferred: 3-deep buffering on the gathered A / HW streams.
        out_pad = run(3)
    except Exception:
        # Fallback: default double-buffering if pl.Buffered lowering is unavailable.
        out_pad = run(None)

    out = out_pad[:N_NODES, :HID_SIZE].astype(jnp.float32)

    # pure-JAX f32 reference (kernel path is bf16, so modest tolerance)
    h_ref = h0
    for (w_self, w_neigh, b) in params:
        neigh = a_mean @ h_ref
        h_ref = jnp.maximum(h_ref @ w_self + neigh @ w_neigh + b, 0.0)

    assert out.shape == (N_NODES, HID_SIZE), out.shape
    max_err = float(jnp.max(jnp.abs(out - h_ref)))
    assert max_err < 0.1, max_err
    # TODO(synk): Grace.loss / semi_loss (projection MLP + InfoNCE) are not part of
    # forward(); only the GCN encoder forward pass is implemented here.
    print("KERNEL_OK")
</pallas_src>

<mosaic_0001>
module attributes {stable_mosaic.version = 11 : i64} {
  func.func @_sparse_agg_kernel(%arg0: i32, %arg1: i32, %arg2: memref<1xi32, #tpu.memory_space<smem>>, %arg3: memref<1xi32, #tpu.memory_space<smem>>, %arg4: memref<128x128xbf16, #tpu.memory_space<vmem>>, %arg5: memref<128x128xbf16, #tpu.memory_space<vmem>>, %arg6: memref<128x128xf32, #tpu.memory_space<vmem>>, %arg7: memref<128x128xbf16, #tpu.memory_space<vmem>>, %arg8: memref<128x128xf32, #tpu.memory_space<vmem>>) attributes {dimension_semantics = [#tpu.dimension_semantics<parallel>, #tpu.dimension_semantics<arbitrary>], iteration_bounds = array<i64: 1, 1>, scalar_prefetch = 2 : i64, scratch_operands = 1 : i64, tpu.core_type = #tpu.core_type<tc>, window_params = [{transform_indices = @transform_0, window_bounds = array<i64: 128, 128>}, {transform_indices = @transform_1, window_bounds = array<i64: 128, 128>}, {transform_indices = @transform_2, window_bounds = array<i64: 128, 128>}, {transform_indices = @transform_3, window_bounds = array<i64: 128, 128>}]} {
    %c0_i32 = arith.constant 0 : i32
    %0 = arith.cmpi eq, %arg1, %c0_i32 : i32
    %1 = arith.extui %0 : i1 to i32
    %c0_i32_0 = arith.constant 0 : i32
    %2 = arith.cmpi ne, %1, %c0_i32_0 : i32
    scf.if %2 {
      %c0 = arith.constant 0 : index
      %c0_4 = arith.constant 0 : index
      %11 = vector.load %arg6[%c0, %c0_4] : memref<128x128xf32, #tpu.memory_space<vmem>>, vector<128x128xf32>
      %c0_5 = arith.constant 0 : index
      %c0_6 = arith.constant 0 : index
      %12 = vector.load %arg8[%c0_5, %c0_6] : memref<128x128xf32, #tpu.memory_space<vmem>>, vector<128x128xf32>
      tpu.vector_store %arg8[%c0_5, %c0_6], %11 {strides = array<i32>} : memref<128x128xf32, #tpu.memory_space<vmem>>, vector<128x128xf32>,
    } else {
    }
    %3 = arith.index_cast %arg0 : i32 to index
    %4 = memref.load %arg3[%3] : memref<1xi32, #tpu.memory_space<smem>>
    %5 = arith.cmpi slt, %arg1, %4 : i32
    %6 = arith.extui %5 : i1 to i32
    %c0_i32_1 = arith.constant 0 : i32
    %7 = arith.cmpi ne, %6, %c0_i32_1 : i32
    scf.if %7 {
      %c0 = arith.constant 0 : index
      %c0_4 = arith.constant 0 : index
      %11 = vector.load %arg8[%c0, %c0_4] : memref<128x128xf32, #tpu.memory_space<vmem>>, vector<128x128xf32>
      %c0_5 = arith.constant 0 : index
      %c0_6 = arith.constant 0 : index
      %12 = vector.load %arg4[%c0_5, %c0_6] : memref<128x128xbf16, #tpu.memory_space<vmem>>, vector<128x128xbf16>
      %c0_7 = arith.constant 0 : index
      %c0_8 = arith.constant 0 : index
      %13 = vector.load %arg5[%c0_7, %c0_8] : memref<128x128xbf16, #tpu.memory_space<vmem>>, vector<128x128xbf16>
      %cst = arith.constant dense<0.000000e+00> : vector<128x128xf32>
      %14 = tpu.matmul %12, %13, %cst {dimension_numbers = #tpu.dot_dimension_numbers<[1], [0], [0], [1], [0, 0, 1, 1], [], []>} : vector<128x128xbf16>, vector<128x128xbf16>, vector<128x128xf32> -> vector<128x128xf32>
      %15 = arith.addf %11, %14 : vector<128x128xf32>
      %c0_9 = arith.constant 0 : index
      %c0_10 = arith.constant 0 : index
      %16 = vector.load %arg8[%c0_9, %c0_10] : memref<128x128xf32, #tpu.memory_space<vmem>>, vector<128x128xf32>
      tpu.vector_store %arg8[%c0_9, %c0_10], %15 {strides = array<i32>} : memref<128x128xf32, #tpu.memory_space<vmem>>, vector<128x128xf32>,
    } else {
    }
    %c0_i32_2 = arith.constant 0 : i32
    %8 = arith.cmpi eq, %arg1, %c0_i32_2 : i32
    %9 = arith.extui %8 : i1 to i32
    %c0_i32_3 = arith.constant 0 : i32
    %10 = arith.cmpi ne, %9, %c0_i32_3 : i32
    scf.if %10 {
      %c0 = arith.constant 0 : index
      %c0_4 = arith.constant 0 : index
      %11 = vector.load %arg8[%c0, %c0_4] : memref<128x128xf32, #tpu.memory_space<vmem>>, vector<128x128xf32>
      %cst = arith.constant 0.000000e+00 : f32
      %12 = vector.broadcast %cst : f32 to vector<128x128xf32>
      %13 = arith.maximumf %11, %12 : vector<128x128xf32>
      %14 = arith.truncf %13 : vector<128x128xf32> to vector<128x128xbf16>
      %c0_5 = arith.constant 0 : index
      %c0_6 = arith.constant 0 : index
      %15 = vector.load %arg7[%c0_5, %c0_6] : memref<128x128xbf16, #tpu.memory_space<vmem>>, vector<128x128xbf16>
      tpu.vector_store %arg7[%c0_5, %c0_6], %14 {strides = array<i32>} : memref<128x128xbf16, #tpu.memory_space<vmem>>, vector<128x128xbf16>,
    } else {
    }
    return
  }
  func.func @transform_0(%arg0: i32, %arg1: i32, %arg2: memref<1xi32, #tpu.memory_space<smem>>, %arg3: memref<1xi32, #tpu.memory_space<smem>>) -> (i32, i32) {
    %c1_i32 = arith.constant 1 : i32
    %0 = arith.muli %arg0, %c1_i32 : i32
    %1 = arith.addi %0, %arg1 : i32
    %2 = arith.index_cast %1 : i32 to index
    %3 = memref.load %arg2[%2] : memref<1xi32, #tpu.memory_space<smem>>
    %c0_i32 = arith.constant 0 : i32
    return %arg0, %3 : i32, i32
  }
  func.func @transform_1(%arg0: i32, %arg1: i32, %arg2: memref<1xi32, #tpu.memory_space<smem>>, %arg3: memref<1xi32, #tpu.memory_space<smem>>) -> (i32, i32) {
    %c1_i32 = arith.constant 1 : i32
    %0 = arith.muli %arg0, %c1_i32 : i32
    %1 = arith.addi %0, %arg1 : i32
    %2 = arith.index_cast %1 : i32 to index
    %3 = memref.load %arg2[%2] : memref<1xi32, #tpu.memory_space<smem>>
    %c0_i32 = arith.constant 0 : i32
    %c0_i32_0 = arith.constant 0 : i32
    return %3, %c0_i32 : i32, i32
  }
  func.func @transform_2(%arg0: i32, %arg1: i32, %arg2: memref<1xi32, #tpu.memory_space<smem>>, %arg3: memref<1xi32, #tpu.memory_space<smem>>) -> (i32, i32) {
    %c0_i32 = arith.constant 0 : i32
    %c0_i32_0 = arith.constant 0 : i32
    return %arg0, %c0_i32 : i32, i32
  }
  func.func @transform_3(%arg0: i32, %arg1: i32, %arg2: memref<1xi32, #tpu.memory_space<smem>>, %arg3: memref<1xi32, #tpu.memory_space<smem>>) -> (i32, i32) {
    %c0_i32 = arith.constant 0 : i32
    %c0_i32_0 = arith.constant 0 : i32
    return %arg0, %c0_i32 : i32, i32
  }
}

module attributes {stable_mosaic.version = 11 : i64} {
  func.func @_prepass_kernel(%arg0: i32, %arg1: memref<128x128xbf16, #tpu.memory_space<vmem>>, %arg2: memref<128x128xbf16, #tpu.memory_space<vmem>>, %arg3: memref<128x128xbf16, #tpu.memory_space<vmem>>, %arg4: memref<1x128xf32, #tpu.memory_space<vmem>>, %arg5: memref<128x128xf32, #tpu.memory_space<vmem>>, %arg6: memref<128x128xbf16, #tpu.memory_space<vmem>>) attributes {dimension_semantics = [#tpu.dimension_semantics<parallel>], iteration_bounds = array<i64: 1>, scalar_prefetch = 0 : i64, scratch_operands = 0 : i64, tpu.core_type = #tpu.core_type<tc>, window_params = [{transform_indices = @transform_0, window_bounds = array<i64: 128, 128>}, {pipeline_mode = #tpu.pipeline_mode<synchronous>, transform_indices = @transform_1, window_bounds = array<i64: 128, 128>}, {pipeline_mode = #tpu.pipeline_mode<synchronous>, transform_indices = @transform_2, window_bounds = array<i64: 128, 128>}, {pipeline_mode = #tpu.pipeline_mode<synchronous>, transform_indices = @transform_3, window_bounds = array<i64: 1, 128>}, {transform_indices = @transform_4, window_bounds = array<i64: 128, 128>}, {transform_indices = @transform_5, window_bounds = array<i64: 128, 128>}]} {
    %c0 = arith.constant 0 : index
    %c0_0 = arith.constant 0 : index
    %0 = vector.load %arg1[%c0, %c0_0] : memref<128x128xbf16, #tpu.memory_space<vmem>>, vector<128x128xbf16>
    %c0_1 = arith.constant 0 : index
    %c0_2 = arith.constant 0 : index
    %1 = vector.load %arg2[%c0_1, %c0_2] : memref<128x128xbf16, #tpu.memory_space<vmem>>, vector<128x128xbf16>
    %cst = arith.constant dense<0.000000e+00> : vector<128x128xf32>
    %2 = tpu.matmul %0, %1, %cst {dimension_numbers = #tpu.dot_dimension_numbers<[1], [0], [0], [1], [0, 0, 1, 1], [], []>} : vector<128x128xbf16>, vector<128x128xbf16>, vector<128x128xf32> -> vector<128x128xf32>
    %c0_3 = arith.constant 0 : index
    %c0_4 = arith.constant 0 : index
    %3 = vector.load %arg4[%c0_3, %c0_4] : memref<1x128xf32, #tpu.memory_space<vmem>>, vector<1x128xf32>
    %4 = vector.broadcast %3 : vector<1x128xf32> to vector<128x128xf32>
    %5 = arith.addf %2, %4 : vector<128x128xf32>
    %c0_5 = arith.constant 0 : index
    %c0_6 = arith.constant 0 : index
    %6 = vector.load %arg5[%c0_5, %c0_6] : memref<128x128xf32, #tpu.memory_space<vmem>>, vector<128x128xf32>
    tpu.vector_store %arg5[%c0_5, %c0_6], %5 {strides = array<i32>} : memref<128x128xf32, #tpu.memory_space<vmem>>, vector<128x128xf32>,
    %c0_7 = arith.constant 0 : index
    %c0_8 = arith.constant 0 : index
    %7 = vector.load %arg3[%c0_7, %c0_8] : memref<128x128xbf16, #tpu.memory_space<vmem>>, vector<128x128xbf16>
    %cst_9 = arith.constant dense<0.000000e+00> : vector<128x128xf32>
    %8 = tpu.matmul %0, %7, %cst_9 {dimension_numbers = #tpu.dot_dimension_numbers<[1], [0], [0], [1], [0, 0, 1, 1], [], []>} : vector<128x128xbf16>, vector<128x128xbf16>, vector<128x128xf32> -> vector<128x128xf32>
    %9 = arith.truncf %8 : vector<128x128xf32> to vector<128x128xbf16>
    %c0_10 = arith.constant 0 : index
    %c0_11 = arith.constant 0 : index
    %10 = vector.load %arg6[%c0_10, %c0_11] : memref<128x128xbf16, #tpu.memory_space<vmem>>, vector<128x128xbf16>
    tpu.vector_store %arg6[%c0_10, %c0_11], %9 {strides = array<i32>} : memref<128x128xbf16, #tpu.memory_space<vmem>>, vector<128x128xbf16>,
    return
  }
  func.func @transform_0(%arg0: i32) -> (i32, i32) {
    %c0_i32 = arith.constant 0 : i32
    %c0_i32_0 = arith.constant 0 : i32
    return %arg0, %c0_i32 : i32, i32
  }
  func.func @transform_1(%arg0: i32) -> (i32, i32) {
    %c0_i32 = arith.constant 0 : i32
    %c0_i32_0 = arith.constant 0 : i32
    %c0_i32_1 = arith.constant 0 : i32
    return %c0_i32, %c0_i32_0 : i32, i32
  }
  func.func @transform_2(%arg0: i32) -> (i32, i32) {
    %c0_i32 = arith.constant 0 : i32
    %c0_i32_0 = arith.constant 0 : i32
    %c0_i32_1 = arith.constant 0 : i32
    return %c0_i32, %c0_i32_0 : i32, i32
  }
  func.func @transform_3(%arg0: i32) -> (i32, i32) {
    %c0_i32 = arith.constant 0 : i32
    %c0_i32_0 = arith.constant 0 : i32
    %c0_i32_1 = arith.constant 0 : i32
    return %c0_i32, %c0_i32_0 : i32, i32
  }
  func.func @transform_4(%arg0: i32) -> (i32, i32) {
    %c0_i32 = arith.constant 0 : i32
    %c0_i32_0 = arith.constant 0 : i32
    return %arg0, %c0_i32 : i32, i32
  }
  func.func @transform_5(%arg0: i32) -> (i32, i32) {
    %c0_i32 = arith.constant 0 : i32
    %c0_i32_0 = arith.constant 0 : i32
    return %arg0, %c0_i32 : i32, i32
  }
}

module attributes {stable_mosaic.version = 11 : i64} {
  func.func @_prepass_kernel(%arg0: i32, %arg1: memref<128x128xbf16, #tpu.memory_space<vmem>>, %arg2: memref<128x128xbf16, #tpu.memory_space<vmem>>, %arg3: memref<128x128xbf16, #tpu.memory_space<vmem>>, %arg4: memref<1x128xf32, #tpu.memory_space<vmem>>, %arg5: memref<128x128xf32, #tpu.memory_space<vmem>>, %arg6: memref<128x128xbf16, #tpu.memory_space<vmem>>) attributes {dimension_semantics = [#tpu.dimension_semantics<parallel>], iteration_bounds = array<i64: 1>, scalar_prefetch = 0 : i64, scratch_operands = 0 : i64, tpu.core_type = #tpu.core_type<tc>, window_params = [{transform_indices = @transform_0, window_bounds = array<i64: 128, 128>}, {pipeline_mode = #tpu.pipeline_mode<synchronous>, transform_indices = @transform_1, window_bounds = array<i64: 128, 128>}, {pipeline_mode = #tpu.pipeline_mode<synchronous>, transform_indices = @transform_2, window_bounds = array<i64: 128, 128>}, {pipeline_mode = #tpu.pipeline_mode<synchronous>, transform_indices = @transform_3, window_bounds = array<i64: 1, 128>}, {transform_indices = @transform_4, window_bounds = array<i64: 128, 128>}, {transform_indices = @transform_5, window_bounds = array<i64: 128, 128>}]} {
    %c0 = arith.constant 0 : index
    %c0_0 = arith.constant 0 : index
    %0 = vector.load %arg1[%c0, %c0_0] : memref<128x128xbf16, #tpu.memory_space<vmem>>, vector<128x128xbf16>
    %c0_1 = arith.constant 0 : index
    %c0_2 = arith.constant 0 : index
    %1 = vector.load %arg2[%c0_1, %c0_2] : memref<128x128xbf16, #tpu.memory_space<vmem>>, vector<128x128xbf16>
    %cst = arith.constant dense<0.000000e+00> : vector<128x128xf32>
    %2 = tpu.matmul %0, %1, %cst {dimension_numbers = #tpu.dot_dimension_numbers<[1], [0], [0], [1], [0, 0, 1, 1], [], []>} : vector<128x128xbf16>, vector<128x128xbf16>, vector<128x128xf32> -> vector<128x128xf32>
    %c0_3 = arith.constant 0 : index
    %c0_4 = arith.constant 0 : index
    %3 = vector.load %arg4[%c0_3, %c0_4] : memref<1x128xf32, #tpu.memory_space<vmem>>, vector<1x128xf32>
    %4 = vector.broadcast %3 : vector<1x128xf32> to vector<128x128xf32>
    %5 = arith.addf %2, %4 : vector<128x128xf32>
    %c0_5 = arith.constant 0 : index
    %c0_6 = arith.constant 0 : index
    %6 = vector.load %arg5[%c0_5, %c0_6] : memref<128x128xf32, #tpu.memory_space<vmem>>, vector<128x128xf32>
    tpu.vector_store %arg5[%c0_5, %c0_6], %5 {strides = array<i32>} : memref<128x128xf32, #tpu.memory_space<vmem>>, vector<128x128xf32>,
    %c0_7 = arith.constant 0 : index
    %c0_8 = arith.constant 0 : index
    %7 = vector.load %arg3[%c0_7, %c0_8] : memref<128x128xbf16, #tpu.memory_space<vmem>>, vector<128x128xbf16>
    %cst_9 = arith.constant dense<0.000000e+00> : vector<128x128xf32>
    %8 = tpu.matmul %0, %7, %cst_9 {dimension_numbers = #tpu.dot_dimension_numbers<[1], [0], [0], [1], [0, 0, 1, 1], [], []>} : vector<128x128xbf16>, vector<128x128xbf16>, vector<128x128xf32> -> vector<128x128xf32>
    %9 = arith.truncf %8 : vector<128x128xf32> to vector<128x128xbf16>
    %c0_10 = arith.constant 0 : index
    %c0_11 = arith.constant 0 : index
    %10 = vector.load %arg6[%c0_10, %c0_11] : memref<128x128xbf16, #tpu.memory_space<vmem>>, vector<128x128xbf16>
    tpu.vector_store %arg6[%c0_10, %c0_11], %9 {strides = array<i32>} : memref<128x128xbf16, #tpu.memory_space<vmem>>, vector<128x128xbf16>,
    return
  }
  func.func @transform_0(%arg0: i32) -> (i32, i32) {
    %c0_i32 = arith.constant 0 : i32
    %c0_i32_0 = arith.constant 0 : i32
    return %arg0, %c0_i32 : i32, i32
  }
  func.func @transform_1(%arg0: i32) -> (i32, i32) {
    %c0_i32 = arith.constant 0 : i32
    %c0_i32_0 = arith.constant 0 : i32
    %c0_i32_1 = arith.constant 0 : i32
    return %c0_i32, %c0_i32_0 : i32, i32
  }
  func.func @transform_2(%arg0: i32) -> (i32, i32) {
    %c0_i32 = arith.constant 0 : i32
    %c0_i32_0 = arith.constant 0 : i32
    %c0_i32_1 = arith.constant 0 : i32
    return %c0_i32, %c0_i32_0 : i32, i32
  }
  func.func @transform_3(%arg0: i32) -> (i32, i32) {
    %c0_i32 = arith.constant 0 : i32
    %c0_i32_0 = arith.constant 0 : i32
    %c0_i32_1 = arith.constant 0 : i32
    return %c0_i32, %c0_i32_0 : i32, i32
  }
  func.func @transform_4(%arg0: i32) -> (i32, i32) {
    %c0_i32 = arith.constant 0 : i32
    %c0_i32_0 = arith.constant 0 : i32
    return %arg0, %c0_i32 : i32, i32
  }
  func.func @transform_5(%arg0: i32) -> (i32, i32) {
    %c0_i32 = arith.constant 0 : i32
    %c0_i32_0 = arith.constant 0 : i32
    return %arg0, %c0_i32 : i32, i32
  }
}

module attributes {stable_mosaic.version = 11 : i64} {
  func.func @_sparse_agg_kernel(%arg0: i32, %arg1: i32, %arg2: memref<1xi32, #tpu.memory_space<smem>>, %arg3: memref<1xi32, #tpu.memory_space<smem>>, %arg4: memref<128x128xbf16, #tpu.memory_space<vmem>>, %arg5: memref<128x128xbf16, #tpu.memory_space<vmem>>, %arg6: memref<128x128xf32, #tpu.memory_space<vmem>>, %arg7: memref<128x128xbf16, #tpu.memory_space<vmem>>, %arg8: memref<128x128xf32, #tpu.memory_space<vmem>>) attributes {dimension_semantics = [#tpu.dimension_semantics<parallel>, #tpu.dimension_semantics<arbitrary>], iteration_bounds = array<i64: 1, 1>, scalar_prefetch = 2 : i64, scratch_operands = 1 : i64, tpu.core_type = #tpu.core_type<tc>, window_params = [{transform_indices = @transform_0, window_bounds = array<i64: 128, 128>}, {transform_indices = @transform_1, window_bounds = array<i64: 128, 128>}, {transform_indices = @transform_2, window_bounds = array<i64: 128, 128>}, {transform_indices = @transform_3, window_bounds = array<i64: 128, 128>}]} {
    %c0_i32 = arith.constant 0 : i32
    %0 = arith.cmpi eq, %arg1, %c0_i32 : i32
    %1 = arith.extui %0 : i1 to i32
    %c0_i32_0 = arith.constant 0 : i32
    %2 = arith.cmpi ne, %1, %c0_i32_0 : i32
    scf.if %2 {
      %c0 = arith.constant 0 : index
      %c0_4 = arith.constant 0 : index
      %11 = vector.load %arg6[%c0, %c0_4] : memref<128x128xf32, #tpu.memory_space<vmem>>, vector<128x128xf32>
      %c0_5 = arith.constant 0 : index
      %c0_6 = arith.constant 0 : index
      %12 = vector.load %arg8[%c0_5, %c0_6] : memref<128x128xf32, #tpu.memory_space<vmem>>, vector<128x128xf32>
      tpu.vector_store %arg8[%c0_5, %c0_6], %11 {strides = array<i32>} : memref<128x128xf32, #tpu.memory_space<vmem>>, vector<128x128xf32>,
    } else {
    }
    %3 = arith.index_cast %arg0 : i32 to index
    %4 = memref.load %arg3[%3] : memref<1xi32, #tpu.memory_space<smem>>
    %5 = arith.cmpi slt, %arg1, %4 : i32
    %6 = arith.extui %5 : i1 to i32
    %c0_i32_1 = arith.constant 0 : i32
    %7 = arith.cmpi ne, %6, %c0_i32_1 : i32
    scf.if %7 {
      %c0 = arith.constant 0 : index
      %c0_4 = arith.constant 0 : index
      %11 = vector.load %arg8[%c0, %c0_4] : memref<128x128xf32, #tpu.memory_space<vmem>>, vector<128x128xf32>
      %c0_5 = arith.constant 0 : index
      %c0_6 = arith.constant 0 : index
      %12 = vector.load %arg4[%c0_5, %c0_6] : memref<128x128xbf16, #tpu.memory_space<vmem>>, vector<128x128xbf16>
      %c0_7 = arith.constant 0 : index
      %c0_8 = arith.constant 0 : index
      %13 = vector.load %arg5[%c0_7, %c0_8] : memref<128x128xbf16, #tpu.memory_space<vmem>>, vector<128x128xbf16>
      %cst = arith.constant dense<0.000000e+00> : vector<128x128xf32>
      %14 = tpu.matmul %12, %13, %cst {dimension_numbers = #tpu.dot_dimension_numbers<[1], [0], [0], [1], [0, 0, 1, 1], [], []>} : vector<128x128xbf16>, vector<128x128xbf16>, vector<128x128xf32> -> vector<128x128xf32>
      %15 = arith.addf %11, %14 : vector<128x128xf32>
      %c0_9 = arith.constant 0 : index
      %c0_10 = arith.constant 0 : index
      %16 = vector.load %arg8[%c0_9, %c0_10] : memref<128x128xf32, #tpu.memory_space<vmem>>, vector<128x128xf32>
      tpu.vector_store %arg8[%c0_9, %c0_10], %15 {strides = array<i32>} : memref<128x128xf32, #tpu.memory_space<vmem>>, vector<128x128xf32>,
    } else {
    }
    %c0_i32_2 = arith.constant 0 : i32
    %8 = arith.cmpi eq, %arg1, %c0_i32_2 : i32
    %9 = arith.extui %8 : i1 to i32
    %c0_i32_3 = arith.constant 0 : i32
    %10 = arith.cmpi ne, %9, %c0_i32_3 : i32
    scf.if %10 {
      %c0 = arith.constant 0 : index
      %c0_4 = arith.constant 0 : index
      %11 = vector.load %arg8[%c0, %c0_4] : memref<128x128xf32, #tpu.memory_space<vmem>>, vector<128x128xf32>
      %cst = arith.constant 0.000000e+00 : f32
      %12 = vector.broadcast %cst : f32 to vector<128x128xf32>
      %13 = arith.maximumf %11, %12 : vector<128x128xf32>
      %14 = arith.truncf %13 : vector<128x128xf32> to vector<128x128xbf16>
      %c0_5 = arith.constant 0 : index
      %c0_6 = arith.constant 0 : index
      %15 = vector.load %arg7[%c0_5, %c0_6] : memref<128x128xbf16, #tpu.memory_space<vmem>>, vector<128x128xbf16>
      tpu.vector_store %arg7[%c0_5, %c0_6], %14 {strides = array<i32>} : memref<128x128xbf16, #tpu.memory_space<vmem>>, vector<128x128xbf16>,
    } else {
    }
    return
  }
  func.func @transform_0(%arg0: i32, %arg1: i32, %arg2: memref<1xi32, #tpu.memory_space<smem>>, %arg3: memref<1xi32, #tpu.memory_space<smem>>) -> (i32, i32) {
    %c1_i32 = arith.constant 1 : i32
    %0 = arith.muli %arg0, %c1_i32 : i32
    %1 = arith.addi %0, %arg1 : i32
    %2 = arith.index_cast %1 : i32 to index
    %3 = memref.load %arg2[%2] : memref<1xi32, #tpu.memory_space<smem>>
    %c0_i32 = arith.constant 0 : i32
    return %arg0, %3 : i32, i32
  }
  func.func @transform_1(%arg0: i32, %arg1: i32, %arg2: memref<1xi32, #tpu.memory_space<smem>>, %arg3: memref<1xi32, #tpu.memory_space<smem>>) -> (i32, i32) {
    %c1_i32 = arith.constant 1 : i32
    %0 = arith.muli %arg0, %c1_i32 : i32
    %1 = arith.addi %0, %arg1 : i32
    %2 = arith.index_cast %1 : i32 to index
    %3 = memref.load %arg2[%2] : memref<1xi32, #tpu.memory_space<smem>>
    %c0_i32 = arith.constant 0 : i32
    %c0_i32_0 = arith.constant 0 : i32
    return %3, %c0_i32 : i32, i32
  }
  func.func @transform_2(%arg0: i32, %arg1: i32, %arg2: memref<1xi32, #tpu.memory_space<smem>>, %arg3: memref<1xi32, #tpu.memory_space<smem>>) -> (i32, i32) {
    %c0_i32 = arith.constant 0 : i32
    %c0_i32_0 = arith.constant 0 : i32
    return %arg0, %c0_i32 : i32, i32
  }
  func.func @transform_3(%arg0: i32, %arg1: i32, %arg2: memref<1xi32, #tpu.memory_space<smem>>, %arg3: memref<1xi32, #tpu.memory_space<smem>>) -> (i32, i32) {
    %c0_i32 = arith.constant 0 : i32
    %c0_i32_0 = arith.constant 0 : i32
    return %arg0, %c0_i32 : i32, i32
  }
}

</mosaic_0001>

<bundles_post_ra>
// kernel: grace_forward.6
= control target key start
LH: loop header
LB: loop body
LE: loop exit
PB: predicated region body
PF: predicated region fallthrough
CT: control target
= control target key end

     0   :  { %s748_s1 = inlined_call_operand.vmem [shape: bf16[128,128], index: 1, kind: input, shape index: {}]   ;;  %s749_s2 = inlined_call_operand.vmem [shape: bf16[128,128], index: 2, kind: input, shape index: {}]   ;;  %s750_s3 = inlined_call_operand.vmem [shape: f32[1,128], index: 3, kind: input, shape index: {}]   ;;  %s751_s0 = inlined_call_operand.vmem [shape: bf16[128,128], index: 0, kind: input, shape index: {}]   ;;  %s752_s4 = inlined_call_operand.vmem [shape: f32[128,128], index: 4, kind: output, shape index: {0}]   ;;  %s753_s5 = inlined_call_operand.vmem [shape: bf16[128,128], index: 5, kind: output, shape index: {1}]  }
   0x1   :  { %v480_v0 = vld [vmem:[%s748_s1 + $0x38] sm:$0xff]  ;;  %v479_v2 = vld [vmem:[%s748_s1 + $0x30] sm:$0xff]  ;;  %v478_v4 = vld [vmem:[%s748_s1 + $0x28] sm:$0xff] }
   0x2   :  { %v488_v1 = vld [vmem:[%s749_s2 + $0x38] sm:$0xff]  ;;  %151 = vmatpush.bf16.msra.mxu0 %v480_v0  ;;  %536 = vmatpush.bf16.msra.mxu2 %v480_v0  ;;  %v487_v3 = vld [vmem:[%s749_s2 + $0x30] sm:$0xff]  ;;  %v486_v5 = vld [vmem:[%s749_s2 + $0x28] sm:$0xff] }
   0x3   :  { %280 = vmatpush.bf16.msra.mxu1 %v488_v1  ;;  %544 = vmatpush.bf16.msra.mxu3 %v488_v1  ;;  %v477_v6 = vld [vmem:[%s748_s1 + $0x20] sm:$0xff]  ;;  %v476_v8 = vld [vmem:[%s748_s1 + $0x18] sm:$0xff]  ;;  %v475_v10 = vld [vmem:[%s748_s1 + $0x10] sm:$0xff] }
   0x4   :  { %v485_v7 = vld [vmem:[%s749_s2 + $0x20] sm:$0xff]  ;;  %v484_v9 = vld [vmem:[%s749_s2 + $0x18] sm:$0xff]  ;;  %v483_v11 = vld [vmem:[%s749_s2 + $0x10] sm:$0xff] }
   0x5   :  { %v474_v12 = vld [vmem:[%s748_s1 + $0x8] sm:$0xff]  ;;  %v473_v14 = vld [vmem:[%s748_s1] sm:$0xff]  ;;  %v467_v20 = vld [vmem:[%s751_s0 + $0x10] sm:$0xff] }
   0x6   :  { %152 = vmatpush.bf16.msra.mxu0 %v479_v2  ;;  %537 = vmatpush.bf16.msra.mxu2 %v479_v2  ;;  %v482_v13 = vld [vmem:[%s749_s2 + $0x8] sm:$0xff]  ;;  %v481_v15 = vld [vmem:[%s749_s2] sm:$0xff]  ;;  %v471_v21 = vld [vmem:[%s751_s0 + $0x30] sm:$0xff] }
   0x7   :  { %281 = vmatpush.bf16.msra.mxu1 %v487_v3  ;;  %545 = vmatpush.bf16.msra.mxu3 %v487_v3  ;;  %v465_v16 = vld [vmem:[%s751_s0] sm:$0xff]  ;;  %v466_v18 = vld [vmem:[%s751_s0 + $0x8] sm:$0xff]  ;;  %v468_v22 = vld [vmem:[%s751_s0 + $0x18] sm:$0xff] }
   0x8   :  { %v469_v17 = vld [vmem:[%s751_s0 + $0x20] sm:$0xff]  ;;  %v470_v19 = vld [vmem:[%s751_s0 + $0x28] sm:$0xff]  ;;  %v472_v23 = vld [vmem:[%s751_s0 + $0x38] sm:$0xff] }
   0x9   :  { %v658_v24 = vld [vmem:[%s750_s3] ss:$0 sm:$0xff] }
   0xa   :  { %153 = vmatpush.bf16.msra.mxu0 %v478_v4  ;;  %538 = vmatpush.bf16.msra.mxu2 %v478_v4 }
   0xb   :  { %282 = vmatpush.bf16.msra.mxu1 %v486_v5  ;;  %546 = vmatpush.bf16.msra.mxu3 %v486_v5 }
   0xe   :  { %154 = vmatpush.bf16.msra.mxu0 %v477_v6  ;;  %539 = vmatpush.bf16.msra.mxu2 %v477_v6 }
   0xf   :  { %283 = vmatpush.bf16.msra.mxu1 %v485_v7  ;;  %547 = vmatpush.bf16.msra.mxu3 %v485_v7 }
  0x12   :  { %155 = vmatpush.bf16.msra.mxu0 %v476_v8  ;;  %540 = vmatpush.bf16.msra.mxu2 %v476_v8 }
  0x13   :  { %284 = vmatpush.bf16.msra.mxu1 %v484_v9  ;;  %548 = vmatpush.bf16.msra.mxu3 %v484_v9 }
  0x16   :  { %156 = vmatpush.bf16.msra.mxu0 %v475_v10  ;;  %541 = vmatpush.bf16.msra.mxu2 %v475_v10 }
  0x17   :  { %285 = vmatpush.bf16.msra.mxu1 %v483_v11  ;;  %549 = vmatpush.bf16.msra.mxu3 %v483_v11 }
  0x1a   :  { %157 = vmatpush.bf16.msra.mxu0 %v474_v12  ;;  %542 = vmatpush.bf16.msra.mxu2 %v474_v12 }
  0x1b   :  { %286 = vmatpush.bf16.msra.mxu1 %v482_v13  ;;  %550 = vmatpush.bf16.msra.mxu3 %v482_v13 }
  0x1e   :  { %158 = vmatpush.bf16.msra.mxu0 %v473_v14  ;;  %543 = vmatpush.bf16.msra.mxu2 %v473_v14 }
  0x1f   :  { %287 = vmatpush.bf16.msra.mxu1 %v481_v15  ;;  %551 = vmatpush.bf16.msra.mxu3 %v481_v15 }
  0x21   :  { %159 = vmatmul.bf16.vlgmr.msra.gmra.mxu0 %v465_v16  ;;  %179 = vmatmul.bf16.vlgmr.msra.gmra.mxu2 %v469_v17 }
  0x22   :  { %288 = vmatmul.bf16.vlgmr.msra.gmra.mxu1 %v465_v16  ;;  %308 = vmatmul.bf16.vlgmr.msra.gmra.mxu3 %v469_v17 }
  0x31   :  { %164 = vmatmul.bf16.gmra.mxu0 %v466_v18  ;;  %184 = vmatmul.bf16.gmra.mxu2 %v470_v19 }
  0x32   :  { %293 = vmatmul.bf16.gmra.mxu1 %v466_v18  ;;  %313 = vmatmul.bf16.gmra.mxu3 %v470_v19 }
  0x41   :  { %169 = vmatmul.bf16.gmra.mxu0 %v467_v20  ;;  %189 = vmatmul.bf16.gmra.mxu2 %v471_v21 }
  0x42   :  { %298 = vmatmul.bf16.gmra.mxu1 %v467_v20  ;;  %318 = vmatmul.bf16.gmra.mxu3 %v471_v21 }
  0x51   :  { %174 = vmatmul.bf16.gmra.mxu0 %v468_v22  ;;  %194 = vmatmul.bf16.gmra.mxu2 %v472_v23 }
  0x52   :  { %303 = vmatmul.bf16.gmra.mxu1 %v468_v22  ;;  %323 = vmatmul.bf16.gmra.mxu3 %v472_v23 }
  0x9e   :  { %v160_v25 = vpop.f32.mrf.mxu0 }
  0x9f   :  { %v161_v26 = vadd.f32 %v658_v24, %v160_v25  ;;  %v289_v27 = vpop.f32.mrf.mxu1 }
  0xa1   :  { %200 = vst [vmem:[%s752_s4] sm:$0xff] %v161_v26 }
  0xa4   :  { %v180_v28 = vpop.f32.mrf.mxu2 }
  0xa5   :  { %v181_v29 = vadd.f32 %v658_v24, %v180_v28  ;;  %v309_v30 = vpop.f32.mrf.mxu3 }
  0xa6   :  { %v162_v31 = vpop.f32.mrf.mxu0 }
  0xa7   :  { %208 = vst [vmem:[%s752_s4 + $0x40] sm:$0xff] %v181_v29  ;;  %v163_v32 = vadd.f32 %v658_v24, %v162_v31  ;;  %v291_v33 = vpop.f32.mrf.mxu1 }
  0xa8   :  { %v492_v34 = vpack.c.bf16 %v291_v33, %v289_v27 }
  0xa9   :  { %201 = vst [vmem:[%s752_s4 + $0x8] sm:$0xff] %v163_v32 }
  0xaa   :  { %493 = vst [vmem:[%s753_s5] sm:$0xff] %v492_v34  }
  0xac   :  { %v182_v35 = vpop.f32.mrf.mxu2 }
  0xad   :  { %v183_v36 = vadd.f32 %v658_v24, %v182_v35  ;;  %v311_v37 = vpop.f32.mrf.mxu3 }
  0xae   :  { %v512_v38 = vpack.c.bf16 %v311_v37, %v309_v30  ;;  %v165_v39 = vpop.f32.mrf.mxu0 }
  0xaf   :  { %209 = vst [vmem:[%s752_s4 + $0x48] sm:$0xff] %v183_v36  ;;  %v166_v40 = vadd.f32 %v658_v24, %v165_v39  ;;  %v294_v41 = vpop.f32.mrf.mxu1 }
  0xb0   :  { %532 = vst [vmem:[%s753_s5 + $0x20] sm:$0xff] %v512_v38  }
  0xb1   :  { %202 = vst [vmem:[%s752_s4 + $0x10] sm:$0xff] %v166_v40 }
  0xb4   :  { %v185_v42 = vpop.f32.mrf.mxu2 }
  0xb5   :  { %v186_v43 = vadd.f32 %v658_v24, %v185_v42  ;;  %v314_v44 = vpop.f32.mrf.mxu3 }
  0xb6   :  { %v167_v45 = vpop.f32.mrf.mxu0 }
  0xb7   :  { %210 = vst [vmem:[%s752_s4 + $0x50] sm:$0xff] %v186_v43  ;;  %v168_v46 = vadd.f32 %v658_v24, %v167_v45  ;;  %v296_v47 = vpop.f32.mrf.mxu1 }
  0xb8   :  { %v497_v48 = vpack.c.bf16 %v296_v47, %v294_v41 }
  0xb9   :  { %203 = vst [vmem:[%s752_s4 + $0x18] sm:$0xff] %v168_v46 }
  0xba   :  { %529 = vst [vmem:[%s753_s5 + $0x8] sm:$0xff] %v497_v48  }
  0xbc   :  { %v187_v49 = vpop.f32.mrf.mxu2 }
  0xbd   :  { %v188_v50 = vadd.f32 %v658_v24, %v187_v49  ;;  %v316_v51 = vpop.f32.mrf.mxu3 }
  0xbe   :  { %v517_v52 = vpack.c.bf16 %v316_v51, %v314_v44  ;;  %v170_v53 = vpop.f32.mrf.mxu0 }
  0xbf   :  { %211 = vst [vmem:[%s752_s4 + $0x58] sm:$0xff] %v188_v50  ;;  %v171_v54 = vadd.f32 %v658_v24, %v170_v53  ;;  %v299_v55 = vpop.f32.mrf.mxu1 }
  0xc0   :  { %533 = vst [vmem:[%s753_s5 + $0x28] sm:$0xff] %v517_v52  }
  0xc1   :  { %204 = vst [vmem:[%s752_s4 + $0x20] sm:$0xff] %v171_v54 }
  0xc4   :  { %v190_v56 = vpop.f32.mrf.mxu2 }
  0xc5   :  { %v191_v57 = vadd.f32 %v658_v24, %v190_v56  ;;  %v319_v58 = vpop.f32.mrf.mxu3 }
  0xc6   :  { %v172_v59 = vpop.f32.mrf.mxu0 }
  0xc7   :  { %212 = vst [vmem:[%s752_s4 + $0x60] sm:$0xff] %v191_v57  ;;  %v173_v60 = vadd.f32 %v658_v24, %v172_v59  ;;  %v301_v61 = vpop.f32.mrf.mxu1 }
  0xc8   :  { %v502_v62 = vpack.c.bf16 %v301_v61, %v299_v55 }
  0xc9   :  { %205 = vst [vmem:[%s752_s4 + $0x28] sm:$0xff] %v173_v60 }
  0xca   :  { %530 = vst [vmem:[%s753_s5 + $0x10] sm:$0xff] %v502_v62  }
  0xcc   :  { %v192_v63 = vpop.f32.mrf.mxu2 }
  0xcd   :  { %v193_v0 = vadd.f32 %v658_v24, %v192_v63  ;;  %v321_v1 = vpop.f32.mrf.mxu3 }
  0xce   :  { %v522_v2 = vpack.c.bf16 %v321_v1, %v319_v58  ;;  %v175_v3 = vpop.f32.mrf.mxu0 }
  0xcf   :  { %213 = vst [vmem:[%s752_s4 + $0x68] sm:$0xff] %v193_v0  ;;  %v176_v4 = vadd.f32 %v658_v24, %v175_v3  ;;  %v304_v5 = vpop.f32.mrf.mxu1 }
  0xd0   :  { %534 = vst [vmem:[%s753_s5 + $0x30] sm:$0xff] %v522_v2  }
  0xd1   :  { %206 = vst [vmem:[%s752_s4 + $0x30] sm:$0xff] %v176_v4 }
  0xd4   :  { %v195_v6 = vpop.f32.mrf.mxu2 }
  0xd5   :  { %v196_v7 = vadd.f32 %v658_v24, %v195_v6  ;;  %v324_v8 = vpop.f32.mrf.mxu3 }
  0xd6   :  { %v177_v9 = vpop.f32.mrf.mxu0 }
  0xd7   :  { %214 = vst [vmem:[%s752_s4 + $0x70] sm:$0xff] %v196_v7  ;;  %v178_v10 = vadd.f32 %v658_v24, %v177_v9  ;;  %v306_v11 = vpop.f32.mrf.mxu1 }
  0xd8   :  { %v507_v12 = vpack.c.bf16 %v306_v11, %v304_v5 }
  0xd9   :  { %207 = vst [vmem:[%s752_s4 + $0x38] sm:$0xff] %v178_v10 }
  0xda   :  { %531 = vst [vmem:[%s753_s5 + $0x18] sm:$0xff] %v507_v12  }
  0xdc   :  { %v197_v13 = vpop.f32.mrf.mxu2 }
  0xdd   :  { %v198_v14 = vadd.f32 %v658_v24, %v197_v13  ;;  %v326_v15 = vpop.f32.mrf.mxu3 }
  0xde   :  { %v527_v16 = vpack.c.bf16 %v326_v15, %v324_v8 }
  0xdf   :  { %215 = vst [vmem:[%s752_s4 + $0x78] sm:$0xff] %v198_v14 }
  0xe0   :  { %535 = vst [vmem:[%s753_s5 + $0x38] sm:$0xff] %v527_v16  }

// kernel: grace_forward.4
= control target key start
LH: loop header
LB: loop body
LE: loop exit
PB: predicated region body
PF: predicated region fallthrough
CT: control target
= control target key end

     0   :  { %11 = vsyncpa [#allocation3], 0  ;;  %s820_s0 = inlined_call_operand.hbm [shape: bf16[128,128], index: 0, kind: input, shape index: {}]   ;;  %s821_s1 = inlined_call_operand.hbm [shape: bf16[128,128], index: 1, kind: input, shape index: {}]   ;;  %s822_s2 = inlined_call_operand.hbm [shape: bf16[128,128], index: 2, kind: input, shape index: {}]   ;;  %s823_s3 = inlined_call_operand.vmem [shape: f32[1,128], index: 3, kind: input, shape index: {}]   ;;  %s824_s4 = inlined_call_operand.vmem [shape: f32[128,128], index: 4, kind: output, shape index: {0}]   ;;  %s825_s5 = inlined_call_operand.vmem [shape: bf16[128,128], index: 5, kind: output, shape index: {1}]  }
   0x1   :  { %12 = vsyncpa [#allocation5], 0  ;;  %s30_s20 = sshll.u32 %s821_s1, 4  ;;  %s683_s21 = smov [#allocation4]   ;;  %s31_s20 = int_to_ptr.hbm [resolvable:$true] %s30_s20 }
   0x2   :  { %s32_s22 = sshll.u32 %s683_s21, 4  ;;  %s17_s25 = sshll.u32 %s820_s0, 4  ;;  %s33_s22 = int_to_ptr.vmem [resolvable:$true] %s32_s22  ;;  %s18_s25 = int_to_ptr.hbm [resolvable:$true] %s17_s25 }
   0x3   :  { %s684_s26 = smov 64   ;;  %s685_s27 = smov 4  }
   0x4   :  { %38 = dma.hbm_to_vmem [thread:$0]  %s31_s20, 1024, %s33_s22, [#allocation5], %s684_s26, %s684_s26, %s685_s27  }
   0x5   :  { %s686_s28 = smov [#allocation2]   ;;  %s43_s7 = sshll.u32 %s822_s2, 4  ;;  %s44_s7 = int_to_ptr.hbm [resolvable:$true] %s43_s7 }
   0x6   :  { %s19_s29 = sshll.u32 %s686_s28, 4  ;;  %s687_s1 = smov [#allocation6]   ;;  %s20_s29 = int_to_ptr.vmem [resolvable:$true] %s19_s29 }
   0x7   :  { %25 = dma.hbm_to_vmem [thread:$0]  %s18_s25, 1024, %s20_s29, [#allocation3], %s684_s26, %s684_s26, %s685_s27  }
   0x8   :  { %s45_s8 = sshll.u32 %s687_s1, 4  ;;  %s46_s8 = int_to_ptr.vmem [resolvable:$true] %s45_s8 }
   0x9   :  { %51 = dma.hbm_to_vmem [thread:$0]  %s44_s7, 1024, %s46_s8, [#allocation5], %s684_s26, %s684_s26, %s685_s27  }
   0xa   :  { %679 = dma.done.wait [#allocation3], 1024  }
   0xb   :  { %680 = vsyncadd [#allocation3], 4294966272 }
   0xc   :  { %681 = dma.done.wait [#allocation5], 2048  }
   0xd   :  { %682 = vsyncadd [#allocation5], 4294965248  ;;  %v529_v0 = vld [vmem:[#allocation4 + $0x38] sm:$0xff]  ;;  %v528_v2 = vld [vmem:[#allocation4 + $0x30] sm:$0xff] }
   0xe   :  { %v537_v1 = vld [vmem:[#allocation6 + $0x38] sm:$0xff]  ;;  %198 = vmatpush.bf16.msra.mxu0 %v529_v0  ;;  %585 = vmatpush.bf16.msra.mxu2 %v529_v0  ;;  %v536_v3 = vld [vmem:[#allocation6 + $0x30] sm:$0xff]  ;;  %v527_v4 = vld [vmem:[#allocation4 + $0x28] sm:$0xff] }
   0xf   :  { %327 = vmatpush.bf16.msra.mxu1 %v537_v1  ;;  %593 = vmatpush.bf16.msra.mxu3 %v537_v1  ;;  %v535_v5 = vld [vmem:[#allocation6 + $0x28] sm:$0xff]  ;;  %v526_v6 = vld [vmem:[#allocation4 + $0x20] sm:$0xff]  ;;  %v525_v8 = vld [vmem:[#allocation4 + $0x18] sm:$0xff] }
  0x10   :  { %v534_v7 = vld [vmem:[#allocation6 + $0x20] sm:$0xff]  ;;  %v533_v9 = vld [vmem:[#allocation6 + $0x18] sm:$0xff]  ;;  %v524_v10 = vld [vmem:[#allocation4 + $0x10] sm:$0xff] }
  0x11   :  { %v532_v11 = vld [vmem:[#allocation6 + $0x10] sm:$0xff]  ;;  %v523_v12 = vld [vmem:[#allocation4 + $0x8] sm:$0xff]  ;;  %v522_v14 = vld [vmem:[#allocation4] sm:$0xff] }
  0x12   :  { %199 = vmatpush.bf16.msra.mxu0 %v528_v2  ;;  %586 = vmatpush.bf16.msra.mxu2 %v528_v2  ;;  %v531_v13 = vld [vmem:[#allocation6 + $0x8] sm:$0xff]  ;;  %v530_v15 = vld [vmem:[#allocation6] sm:$0xff]  ;;  %v516_v20 = vld [vmem:[#allocation2 + $0x10] sm:$0xff] }
  0x13   :  { %328 = vmatpush.bf16.msra.mxu1 %v536_v3  ;;  %594 = vmatpush.bf16.msra.mxu3 %v536_v3  ;;  %v514_v16 = vld [vmem:[#allocation2] sm:$0xff]  ;;  %v515_v18 = vld [vmem:[#allocation2 + $0x8] sm:$0xff]  ;;  %v520_v21 = vld [vmem:[#allocation2 + $0x30] sm:$0xff] }
  0x14   :  { %v518_v17 = vld [vmem:[#allocation2 + $0x20] sm:$0xff]  ;;  %v519_v19 = vld [vmem:[#allocation2 + $0x28] sm:$0xff]  ;;  %v517_v22 = vld [vmem:[#allocation2 + $0x18] sm:$0xff] }
  0x15   :  { %v521_v23 = vld [vmem:[#allocation2 + $0x38] sm:$0xff]  ;;  %v730_v24 = vld [vmem:[%s823_s3] ss:$0 sm:$0xff] }
  0x16   :  { %200 = vmatpush.bf16.msra.mxu0 %v527_v4  ;;  %587 = vmatpush.bf16.msra.mxu2 %v527_v4 }
  0x17   :  { %329 = vmatpush.bf16.msra.mxu1 %v535_v5  ;;  %595 = vmatpush.bf16.msra.mxu3 %v535_v5 }
  0x1a   :  { %201 = vmatpush.bf16.msra.mxu0 %v526_v6  ;;  %588 = vmatpush.bf16.msra.mxu2 %v526_v6 }
  0x1b   :  { %330 = vmatpush.bf16.msra.mxu1 %v534_v7  ;;  %596 = vmatpush.bf16.msra.mxu3 %v534_v7 }
  0x1e   :  { %202 = vmatpush.bf16.msra.mxu0 %v525_v8  ;;  %589 = vmatpush.bf16.msra.mxu2 %v525_v8 }
  0x1f   :  { %331 = vmatpush.bf16.msra.mxu1 %v533_v9  ;;  %597 = vmatpush.bf16.msra.mxu3 %v533_v9 }
  0x22   :  { %203 = vmatpush.bf16.msra.mxu0 %v524_v10  ;;  %590 = vmatpush.bf16.msra.mxu2 %v524_v10 }
  0x23   :  { %332 = vmatpush.bf16.msra.mxu1 %v532_v11  ;;  %598 = vmatpush.bf16.msra.mxu3 %v532_v11 }
  0x26   :  { %204 = vmatpush.bf16.msra.mxu0 %v523_v12  ;;  %591 = vmatpush.bf16.msra.mxu2 %v523_v12 }
  0x27   :  { %333 = vmatpush.bf16.msra.mxu1 %v531_v13  ;;  %599 = vmatpush.bf16.msra.mxu3 %v531_v13 }
  0x2a   :  { %205 = vmatpush.bf16.msra.mxu0 %v522_v14  ;;  %592 = vmatpush.bf16.msra.mxu2 %v522_v14 }
  0x2b   :  { %334 = vmatpush.bf16.msra.mxu1 %v530_v15  ;;  %600 = vmatpush.bf16.msra.mxu3 %v530_v15 }
  0x2d   :  { %206 = vmatmul.bf16.vlgmr.msra.gmra.mxu0 %v514_v16  ;;  %226 = vmatmul.bf16.vlgmr.msra.gmra.mxu2 %v518_v17 }
  0x2e   :  { %335 = vmatmul.bf16.vlgmr.msra.gmra.mxu1 %v514_v16  ;;  %355 = vmatmul.bf16.vlgmr.msra.gmra.mxu3 %v518_v17 }
  0x3d   :  { %211 = vmatmul.bf16.gmra.mxu0 %v515_v18  ;;  %231 = vmatmul.bf16.gmra.mxu2 %v519_v19 }
  0x3e   :  { %340 = vmatmul.bf16.gmra.mxu1 %v515_v18  ;;  %360 = vmatmul.bf16.gmra.mxu3 %v519_v19 }
  0x4d   :  { %216 = vmatmul.bf16.gmra.mxu0 %v516_v20  ;;  %236 = vmatmul.bf16.gmra.mxu2 %v520_v21 }
  0x4e   :  { %345 = vmatmul.bf16.gmra.mxu1 %v516_v20  ;;  %365 = vmatmul.bf16.gmra.mxu3 %v520_v21 }
  0x5d   :  { %221 = vmatmul.bf16.gmra.mxu0 %v517_v22  ;;  %241 = vmatmul.bf16.gmra.mxu2 %v521_v23 }
  0x5e   :  { %350 = vmatmul.bf16.gmra.mxu1 %v517_v22  ;;  %370 = vmatmul.bf16.gmra.mxu3 %v521_v23 }
  0xaa   :  { %v207_v25 = vpop.f32.mrf.mxu0 }
  0xab   :  { %v208_v26 = vadd.f32 %v730_v24, %v207_v25  ;;  %v336_v27 = vpop.f32.mrf.mxu1 }
  0xad   :  { %247 = vst [vmem:[%s824_s4] sm:$0xff] %v208_v26 }
  0xb0   :  { %v227_v28 = vpop.f32.mrf.mxu2 }
  0xb1   :  { %v228_v29 = vadd.f32 %v730_v24, %v227_v28  ;;  %v356_v30 = vpop.f32.mrf.mxu3 }
  0xb2   :  { %v209_v31 = vpop.f32.mrf.mxu0 }
  0xb3   :  { %255 = vst [vmem:[%s824_s4 + $0x40] sm:$0xff] %v228_v29  ;;  %v210_v32 = vadd.f32 %v730_v24, %v209_v31  ;;  %v338_v33 = vpop.f32.mrf.mxu1 }
  0xb4   :  { %v541_v34 = vpack.c.bf16 %v338_v33, %v336_v27 }
  0xb5   :  { %248 = vst [vmem:[%s824_s4 + $0x8] sm:$0xff] %v210_v32 }
  0xb6   :  { %542 = vst [vmem:[%s825_s5] sm:$0xff] %v541_v34  }
  0xb8   :  { %v229_v35 = vpop.f32.mrf.mxu2 }
  0xb9   :  { %v230_v36 = vadd.f32 %v730_v24, %v229_v35  ;;  %v358_v37 = vpop.f32.mrf.mxu3 }
  0xba   :  { %v561_v38 = vpack.c.bf16 %v358_v37, %v356_v30  ;;  %v212_v39 = vpop.f32.mrf.mxu0 }
  0xbb   :  { %256 = vst [vmem:[%s824_s4 + $0x48] sm:$0xff] %v230_v36  ;;  %v213_v40 = vadd.f32 %v730_v24, %v212_v39  ;;  %v341_v41 = vpop.f32.mrf.mxu1 }
  0xbc   :  { %581 = vst [vmem:[%s825_s5 + $0x20] sm:$0xff] %v561_v38  }
  0xbd   :  { %249 = vst [vmem:[%s824_s4 + $0x10] sm:$0xff] %v213_v40 }
  0xc0   :  { %v232_v42 = vpop.f32.mrf.mxu2 }
  0xc1   :  { %v233_v43 = vadd.f32 %v730_v24, %v232_v42  ;;  %v361_v44 = vpop.f32.mrf.mxu3 }
  0xc2   :  { %v214_v45 = vpop.f32.mrf.mxu0 }
  0xc3   :  { %257 = vst [vmem:[%s824_s4 + $0x50] sm:$0xff] %v233_v43  ;;  %v215_v46 = vadd.f32 %v730_v24, %v214_v45  ;;  %v343_v47 = vpop.f32.mrf.mxu1 }
  0xc4   :  { %v546_v48 = vpack.c.bf16 %v343_v47, %v341_v41 }
  0xc5   :  { %250 = vst [vmem:[%s824_s4 + $0x18] sm:$0xff] %v215_v46 }
  0xc6   :  { %578 = vst [vmem:[%s825_s5 + $0x8] sm:$0xff] %v546_v48  }
  0xc8   :  { %v234_v49 = vpop.f32.mrf.mxu2 }
  0xc9   :  { %v235_v50 = vadd.f32 %v730_v24, %v234_v49  ;;  %v363_v51 = vpop.f32.mrf.mxu3 }
  0xca   :  { %v566_v52 = vpack.c.bf16 %v363_v51, %v361_v44  ;;  %v217_v53 = vpop.f32.mrf.mxu0 }
  0xcb   :  { %258 = vst [vmem:[%s824_s4 + $0x58] sm:$0xff] %v235_v50  ;;  %v218_v54 = vadd.f32 %v730_v24, %v217_v53  ;;  %v346_v55 = vpop.f32.mrf.mxu1 }
  0xcc   :  { %582 = vst [vmem:[%s825_s5 + $0x28] sm:$0xff] %v566_v52  }
  0xcd   :  { %251 = vst [vmem:[%s824_s4 + $0x20] sm:$0xff] %v218_v54 }
  0xd0   :  { %v237_v56 = vpop.f32.mrf.mxu2 }
  0xd1   :  { %v238_v57 = vadd.f32 %v730_v24, %v237_v56  ;;  %v366_v58 = vpop.f32.mrf.mxu3 }
  0xd2   :  { %v219_v59 = vpop.f32.mrf.mxu0 }
  0xd3   :  { %259 = vst [vmem:[%s824_s4 + $0x60] sm:$0xff] %v238_v57  ;;  %v220_v60 = vadd.f32 %v730_v24, %v219_v59  ;;  %v348_v61 = vpop.f32.mrf.mxu1 }
  0xd4   :  { %v551_v62 = vpack.c.bf16 %v348_v61, %v346_v55 }
  0xd5   :  { %252 = vst [vmem:[%s824_s4 + $0x28] sm:$0xff] %v220_v60 }
  0xd6   :  { %579 = vst [vmem:[%s825_s5 + $0x10] sm:$0xff] %v551_v62  }
  0xd8   :  { %v239_v63 = vpop.f32.mrf.mxu2 }
  0xd9   :  { %v240_v0 = vadd.f32 %v730_v24, %v239_v63  ;;  %v368_v1 = vpop.f32.mrf.mxu3 }
  0xda   :  { %v571_v2 = vpack.c.bf16 %v368_v1, %v366_v58  ;;  %v222_v3 = vpop.f32.mrf.mxu0 }
  0xdb   :  { %260 = vst [vmem:[%s824_s4 + $0x68] sm:$0xff] %v240_v0  ;;  %v223_v4 = vadd.f32 %v730_v24, %v222_v3  ;;  %v351_v5 = vpop.f32.mrf.mxu1 }
  0xdc   :  { %583 = vst [vmem:[%s825_s5 + $0x30] sm:$0xff] %v571_v2  }
  0xdd   :  { %253 = vst [vmem:[%s824_s4 + $0x30] sm:$0xff] %v223_v4 }
  0xe0   :  { %v242_v6 = vpop.f32.mrf.mxu2 }
  0xe1   :  { %v243_v7 = vadd.f32 %v730_v24, %v242_v6  ;;  %v371_v8 = vpop.f32.mrf.mxu3 }
  0xe2   :  { %v224_v9 = vpop.f32.mrf.mxu0 }
  0xe3   :  { %261 = vst [vmem:[%s824_s4 + $0x70] sm:$0xff] %v243_v7  ;;  %v225_v10 = vadd.f32 %v730_v24, %v224_v9  ;;  %v353_v11 = vpop.f32.mrf.mxu1 }
  0xe4   :  { %v556_v12 = vpack.c.bf16 %v353_v11, %v351_v5 }
  0xe5   :  { %254 = vst [vmem:[%s824_s4 + $0x38] sm:$0xff] %v225_v10 }
  0xe6   :  { %580 = vst [vmem:[%s825_s5 + $0x18] sm:$0xff] %v556_v12  }
  0xe8   :  { %v244_v13 = vpop.f32.mrf.mxu2 }
  0xe9   :  { %v245_v14 = vadd.f32 %v730_v24, %v244_v13  ;;  %v373_v15 = vpop.f32.mrf.mxu3 }
  0xea   :  { %v576_v16 = vpack.c.bf16 %v373_v15, %v371_v8 }
  0xeb   :  { %262 = vst [vmem:[%s824_s4 + $0x78] sm:$0xff] %v245_v14 }
  0xec   :  { %584 = vst [vmem:[%s825_s5 + $0x38] sm:$0xff] %v576_v16  }
  0xed   :  { %416 = vsyncpa [#allocation3], 1 }
  0xee   :  { %417 = vsyncpa [#allocation5], 1 }

// kernel: grace_forward.7
= control target key start
LH: loop header
LB: loop body
LE: loop exit
PB: predicated region body
PF: predicated region fallthrough
CT: control target
= control target key end

     0   :  { %12 = vsyncpa [#allocation7], 0  ;;  %s738_s0 = inlined_call_operand.<no memory space> [shape: s32[1], index: 0, kind: input, shape index: {}]   ;;  %s739_s1 = inlined_call_operand.<no memory space> [shape: s32[1], index: 1, kind: input, shape index: {}]   ;;  %s740_s2 = inlined_call_operand.vmem [shape: bf16[128,128], index: 2, kind: input, shape index: {}]   ;;  %s741_s3 = inlined_call_operand.vmem [shape: bf16[128,128], index: 3, kind: input, shape index: {}]   ;;  %s742_s4 = inlined_call_operand.vmem [shape: f32[128,128], index: 4, kind: input, shape index: {}]   ;;  %s743_s5 = inlined_call_operand.hbm [shape: bf16[128,128], index: 5, kind: output, shape index: {}]  }
   0x1   :  { %p52_p0 = scmp.lt.s32.totalorder %s738_s0, 0  ;;  %s432_s22 = sshll.u32 %s738_s0, 4  ;;  %v72_v0 = vld [vmem:[%s742_s4] sm:$0xff]  ;;  %v73_v1 = vld [vmem:[%s742_s4 + $0x8] sm:$0xff]  ;;  %v74_v2 = vld [vmem:[%s742_s4 + $0x10] sm:$0xff] }
   0x2   :  { %p61_p1 = scmp.lt.s32.totalorder %s432_s22, 15  ;;  %88 = vst [vmem:[#allocation2 + $0x30] sm:$0xff] %v72_v0  ;;  %v75_v3 = vld [vmem:[%s742_s4 + $0x18] sm:$0xff]  ;;  %v76_v4 = vld [vmem:[%s742_s4 + $0x20] sm:$0xff]  ;;  %v77_v5 = vld [vmem:[%s742_s4 + $0x28] sm:$0xff]  ;;  %p435_p2 = scmp.le.s32.totalorder %s739_s1, 0 }
   0x3   :  { %s745_s0 = smov (!%p52_p0, %s738_s0), 0  ;;  %89 = vst [vmem:[#allocation2] sm:$0xff] %v73_v1  ;;  %v78_v6 = vld [vmem:[%s742_s4 + $0x30] sm:$0xff]  ;;  %v79_v7 = vld [vmem:[%s742_s4 + $0x38] sm:$0xff]  ;;  %v80_v8 = vld [vmem:[%s742_s4 + $0x40] sm:$0xff] }
   0x4   :  { %s747_s22 = smov (!%p61_p1, %s432_s22), 15  ;;  %90 = vst [vmem:[#allocation2 + $0x58] sm:$0xff] %v74_v2  ;;  %s431_s12 = sshll.u32 %s745_s0, 2  ;;  %v81_v9 = vld [vmem:[%s742_s4 + $0x48] sm:$0xff]  ;;  %v82_v10 = vld [vmem:[%s742_s4 + $0x50] sm:$0xff]  ;;  %v83_v11 = vld [vmem:[%s742_s4 + $0x58] sm:$0xff] }
   0x5   :  { %91 = vst [vmem:[#allocation2 + $0x18] sm:$0xff] %v75_v3  ;;  %s682_s17 = scalar_lea.vmem %s740_s2, %s431_s12  ;;  %s433_s18 = sshll.u32 %s747_s22, 2  ;;  %v84_v12 = vld [vmem:[%s742_s4 + $0x60] sm:$0xff]  ;;  %v85_v13 = vld [vmem:[%s742_s4 + $0x68] sm:$0xff]  ;;  %v86_v14 = vld [vmem:[%s742_s4 + $0x70] sm:$0xff] }
   0x6   :  { %92 = vst [vmem:[#allocation2 + $0x50] sm:$0xff] %v76_v4  ;;  %s690_s0 = scalar_lea.vmem %s741_s3, %s433_s18  ;;  %v87_v15 = vld [vmem:[%s742_s4 + $0x78] sm:$0xff] }
   0x7   :  { %93 = vst [vmem:[#allocation2 + $0x68] sm:$0xff] %v77_v5 }
   0x8   :  { %94 = vst [vmem:[#allocation2 + $0x8] sm:$0xff] %v78_v6 }
   0x9   :  { %95 = vst [vmem:[#allocation2 + $0x48] sm:$0xff] %v79_v7 }
   0xa   :  { %96 = vst [vmem:[#allocation2 + $0x40] sm:$0xff] %v80_v8 }
   0xb   :  { %97 = vst [vmem:[#allocation2 + $0x20] sm:$0xff] %v81_v9 }
   0xc   :  { %98 = vst [vmem:[#allocation2 + $0x10] sm:$0xff] %v82_v10 }
   0xd   :  { %99 = vst [vmem:[#allocation2 + $0x38] sm:$0xff] %v83_v11  ;;  %108 = sbr.rel (%p435_p2) target bundleno = 211 (0xd3), region = 21 }
   0xe   :  { %100 = vst [vmem:[#allocation2 + $0x60] sm:$0xff] %v84_v12 }
   0xf   :  { %101 = vst [vmem:[#allocation2 + $0x70] sm:$0xff] %v85_v13 }
  0x10   :  { %102 = vst [vmem:[#allocation2 + $0x78] sm:$0xff] %v86_v14 }
  0x11   :  { %103 = vst [vmem:[#allocation2 + $0x28] sm:$0xff] %v87_v15 }
  0x12   :  { %v515_v16 = vld [vmem:[%s690_s0 + $0x38] sm:$0xff]  ;;  %v514_v17 = vld [vmem:[%s690_s0 + $0x30] sm:$0xff]  ;;  %v513_v18 = vld [vmem:[%s690_s0 + $0x28] sm:$0xff] }
  0x13   :  { %253 = vmatpush.bf16.msra.mxu0 %v515_v16  ;;  %563 = vmatpush.bf16.msra.mxu1 %v515_v16  ;;  %v512_v19 = vld [vmem:[%s690_s0 + $0x20] sm:$0xff]  ;;  %v511_v20 = vld [vmem:[%s690_s0 + $0x18] sm:$0xff]  ;;  %v510_v21 = vld [vmem:[%s690_s0 + $0x10] sm:$0xff] }
  0x14   :  { %564 = vmatpush.bf16.msra.mxu2 %v515_v16  ;;  %565 = vmatpush.bf16.msra.mxu3 %v515_v16  ;;  %v509_v22 = vld [vmem:[%s690_s0 + $0x8] sm:$0xff]  ;;  %v508_v23 = vld [vmem:[%s690_s0] sm:$0xff]  ;;  %v502_v25 = vld [vmem:[%s682_s17 + $0x10] sm:$0xff] }
  0x15   :  { %v500_v24 = vld [vmem:[%s682_s17] sm:$0xff]  ;;  %v506_v27 = vld [vmem:[%s682_s17 + $0x30] sm:$0xff]  ;;  %v501_v28 = vld [vmem:[%s682_s17 + $0x8] sm:$0xff] }
  0x16   :  { %v504_v26 = vld [vmem:[%s682_s17 + $0x20] sm:$0xff]  ;;  %v503_v29 = vld [vmem:[%s682_s17 + $0x18] sm:$0xff]  ;;  %v505_v30 = vld [vmem:[%s682_s17 + $0x28] sm:$0xff] }
  0x17   :  { %254 = vmatpush.bf16.msra.mxu0 %v514_v17  ;;  %566 = vmatpush.bf16.msra.mxu1 %v514_v17  ;;  %v507_v31 = vld [vmem:[%s682_s17 + $0x38] sm:$0xff]  ;;  %v109_v32 = vld [vmem:[#allocation2 + $0x30] sm:$0xff]  ;;  %v117_v38 = vld [vmem:[#allocation2 + $0x40] sm:$0xff] }
  0x18   :  { %567 = vmatpush.bf16.msra.mxu2 %v514_v17  ;;  %568 = vmatpush.bf16.msra.mxu3 %v514_v17  ;;  %v113_v33 = vld [vmem:[#allocation2 + $0x50] sm:$0xff]  ;;  %v121_v39 = vld [vmem:[#allocation2 + $0x60] sm:$0xff]  ;;  %v114_v41 = vld [vmem:[#allocation2 + $0x68] sm:$0xff] }
  0x19   :  { %v110_v40 = vld [vmem:[#allocation2] sm:$0xff]  ;;  %v122_v51 = vld [vmem:[#allocation2 + $0x70] sm:$0xff]  ;;  %v111_v52 = vld [vmem:[#allocation2 + $0x58] sm:$0xff] }
  0x1a   :  { %v118_v50 = vld [vmem:[#allocation2 + $0x20] sm:$0xff]  ;;  %v115_v53 = vld [vmem:[#allocation2 + $0x8] sm:$0xff]  ;;  %v119_v62 = vld [vmem:[#allocation2 + $0x10] sm:$0xff] }
  0x1b   :  { %255 = vmatpush.bf16.msra.mxu0 %v513_v18  ;;  %569 = vmatpush.bf16.msra.mxu1 %v513_v18  ;;  %v123_v63 = vld [vmem:[#allocation2 + $0x78] sm:$0xff]  ;;  %v116_v1 = vld [vmem:[#allocation2 + $0x48] sm:$0xff] }
  0x1c   :  { %570 = vmatpush.bf16.msra.mxu2 %v513_v18  ;;  %571 = vmatpush.bf16.msra.mxu3 %v513_v18  ;;  %v112_v0 = vld [vmem:[#allocation2 + $0x18] sm:$0xff]  ;;  %v124_v11 = vld [vmem:[#allocation2 + $0x28] sm:$0xff] }
  0x1d   :  { %v120_v10 = vld [vmem:[#allocation2 + $0x38] sm:$0xff] }
  0x1f   :  { %256 = vmatpush.bf16.msra.mxu0 %v512_v19  ;;  %572 = vmatpush.bf16.msra.mxu1 %v512_v19 }
  0x20   :  { %573 = vmatpush.bf16.msra.mxu2 %v512_v19  ;;  %574 = vmatpush.bf16.msra.mxu3 %v512_v19 }
  0x23   :  { %257 = vmatpush.bf16.msra.mxu0 %v511_v20  ;;  %575 = vmatpush.bf16.msra.mxu1 %v511_v20 }
  0x24   :  { %576 = vmatpush.bf16.msra.mxu2 %v511_v20  ;;  %577 = vmatpush.bf16.msra.mxu3 %v511_v20 }
  0x27   :  { %258 = vmatpush.bf16.msra.mxu0 %v510_v21  ;;  %578 = vmatpush.bf16.msra.mxu1 %v510_v21 }
  0x28   :  { %579 = vmatpush.bf16.msra.mxu2 %v510_v21  ;;  %580 = vmatpush.bf16.msra.mxu3 %v510_v21 }
  0x2b   :  { %259 = vmatpush.bf16.msra.mxu0 %v509_v22  ;;  %581 = vmatpush.bf16.msra.mxu1 %v509_v22 }
  0x2c   :  { %582 = vmatpush.bf16.msra.mxu2 %v509_v22  ;;  %583 = vmatpush.bf16.msra.mxu3 %v509_v22 }
  0x2f   :  { %260 = vmatpush.bf16.msra.mxu0 %v508_v23  ;;  %584 = vmatpush.bf16.msra.mxu1 %v508_v23 }
  0x30   :  { %585 = vmatpush.bf16.msra.mxu2 %v508_v23  ;;  %586 = vmatpush.bf16.msra.mxu3 %v508_v23 }
  0x32   :  { %261 = vmatmul.bf16.vlgmr.msra.gmra.mxu0 %v500_v24  ;;  %271 = vmatmul.bf16.vlgmr.msra.gmra.mxu1 %v502_v25 }
  0x33   :  { %281 = vmatmul.bf16.vlgmr.msra.gmra.mxu2 %v504_v26  ;;  %291 = vmatmul.bf16.vlgmr.msra.gmra.mxu3 %v506_v27 }
  0x42   :  { %266 = vmatmul.bf16.gmra.mxu0 %v501_v28  ;;  %276 = vmatmul.bf16.gmra.mxu1 %v503_v29 }
  0x43   :  { %286 = vmatmul.bf16.gmra.mxu2 %v505_v30  ;;  %296 = vmatmul.bf16.gmra.mxu3 %v507_v31 }
  0xaf   :  { %v262_v34 = vpop.f32.mrf.mxu0  ;;  %v272_v35 = vpop.f32.mrf.mxu1 }
  0xb0   :  { %v302_v36 = vadd.f32 %v262_v34, %v109_v32  ;;  %v306_v37 = vadd.f32 %v272_v35, %v113_v33 }
  0xb2   :  { %318 = vst [vmem:[#allocation2 + $0x30] sm:$0xff] %v302_v36 }
  0xb3   :  { %322 = vst [vmem:[#allocation2 + $0x50] sm:$0xff] %v306_v37 }
  0xb6   :  { %v282_v42 = vpop.f32.mrf.mxu2  ;;  %v292_v43 = vpop.f32.mrf.mxu3 }
  0xb7   :  { %v310_v44 = vadd.f32 %v282_v42, %v117_v38  ;;  %v314_v45 = vadd.f32 %v292_v43, %v121_v39  ;;  %v264_v46 = vpop.f32.mrf.mxu0  ;;  %v274_v47 = vpop.f32.mrf.mxu1 }
  0xb8   :  { %v303_v48 = vadd.f32 %v264_v46, %v110_v40  ;;  %v307_v49 = vadd.f32 %v274_v47, %v114_v41 }
  0xb9   :  { %326 = vst [vmem:[#allocation2 + $0x40] sm:$0xff] %v310_v44 }
  0xba   :  { %330 = vst [vmem:[#allocation2 + $0x60] sm:$0xff] %v314_v45 }
  0xbb   :  { %319 = vst [vmem:[#allocation2] sm:$0xff] %v303_v48 }
  0xbc   :  { %323 = vst [vmem:[#allocation2 + $0x68] sm:$0xff] %v307_v49 }
  0xbe   :  { %v284_v54 = vpop.f32.mrf.mxu2  ;;  %v294_v55 = vpop.f32.mrf.mxu3 }
  0xbf   :  { %v311_v56 = vadd.f32 %v284_v54, %v118_v50  ;;  %v315_v57 = vadd.f32 %v294_v55, %v122_v51  ;;  %v267_v58 = vpop.f32.mrf.mxu0  ;;  %v277_v59 = vpop.f32.mrf.mxu1 }
  0xc0   :  { %v304_v60 = vadd.f32 %v267_v58, %v111_v52  ;;  %v308_v61 = vadd.f32 %v277_v59, %v115_v53 }
  0xc1   :  { %327 = vst [vmem:[#allocation2 + $0x20] sm:$0xff] %v311_v56 }
  0xc2   :  { %331 = vst [vmem:[#allocation2 + $0x70] sm:$0xff] %v315_v57 }
  0xc3   :  { %320 = vst [vmem:[#allocation2 + $0x58] sm:$0xff] %v304_v60 }
  0xc4   :  { %324 = vst [vmem:[#allocation2 + $0x8] sm:$0xff] %v308_v61 }
  0xc6   :  { %v287_v2 = vpop.f32.mrf.mxu2  ;;  %v297_v3 = vpop.f32.mrf.mxu3 }
  0xc7   :  { %v312_v4 = vadd.f32 %v287_v2, %v119_v62  ;;  %v316_v5 = vadd.f32 %v297_v3, %v123_v63  ;;  %v269_v6 = vpop.f32.mrf.mxu0  ;;  %v279_v7 = vpop.f32.mrf.mxu1 }
  0xc8   :  { %v305_v8 = vadd.f32 %v269_v6, %v112_v0  ;;  %v309_v9 = vadd.f32 %v279_v7, %v116_v1 }
  0xc9   :  { %328 = vst [vmem:[#allocation2 + $0x10] sm:$0xff] %v312_v4 }
  0xca   :  { %332 = vst [vmem:[#allocation2 + $0x78] sm:$0xff] %v316_v5 }
  0xcb   :  { %321 = vst [vmem:[#allocation2 + $0x18] sm:$0xff] %v305_v8 }
  0xcc   :  { %325 = vst [vmem:[#allocation2 + $0x48] sm:$0xff] %v309_v9 }
  0xce   :  { %v289_v12 = vpop.f32.mrf.mxu2  ;;  %v299_v13 = vpop.f32.mrf.mxu3 }
  0xcf   :  { %v313_v14 = vadd.f32 %v289_v12, %v120_v10  ;;  %v317_v15 = vadd.f32 %v299_v13, %v124_v11 }
  0xd1   :  { %329 = vst [vmem:[#allocation2 + $0x38] sm:$0xff] %v313_v14 }
  0xd2   :  { %333 = vst [vmem:[#allocation2 + $0x28] sm:$0xff] %v317_v15 }
  0xd3 PF:  { %v337_v16 = vld [vmem:[#allocation2 + $0x30] sm:$0xff]  ;;  %v338_v17 = vld [vmem:[#allocation2] sm:$0xff]  ;;  %v339_v18 = vld [vmem:[#allocation2 + $0x58] sm:$0xff]  ;;  %s616_s1 = smov [#allocation6]   ;;  %s407_s16 = sshll.u32 %s743_s5, 4  ;;  %s408_s16 = int_to_ptr.hbm [resolvable:$true] %s407_s16 }
  0xd4   :  { %v353_v19 = vmax.f32 %v337_v16, 0.0  ;;  %v354_v20 = vmax.f32 %v338_v17, 0.0  ;;  %v340_v21 = vld [vmem:[#allocation2 + $0x18] sm:$0xff]  ;;  %v355_v22 = vmax.f32 %v339_v18, 0.0  ;;  %v341_v23 = vld [vmem:[#allocation2 + $0x50] sm:$0xff]  ;;  %v342_v24 = vld [vmem:[#allocation2 + $0x68] sm:$0xff] }
  0xd5   :  { %v356_v25 = vmax.f32 %v340_v21, 0.0  ;;  %v357_v26 = vmax.f32 %v341_v23, 0.0  ;;  %v358_v27 = vmax.f32 %v342_v24, 0.0  ;;  %v343_v28 = vld [vmem:[#allocation2 + $0x8] sm:$0xff]  ;;  %v345_v30 = vld [vmem:[#allocation2 + $0x40] sm:$0xff]  ;;  %v347_v36 = vld [vmem:[#allocation2 + $0x10] sm:$0xff] }
  0xd6   :  { %v344_v29 = vld [vmem:[#allocation2 + $0x48] sm:$0xff]  ;;  %v519_v31 = vpack.c.bf16 %v354_v20, %v353_v19  ;;  %v359_v32 = vmax.f32 %v343_v28, 0.0  ;;  %v346_v34 = vld [vmem:[#allocation2 + $0x20] sm:$0xff]  ;;  %v361_v35 = vmax.f32 %v345_v30, 0.0  ;;  %v363_v41 = vmax.f32 %v347_v36, 0.0  ;;  %s405_s4 = sshll.u32 %s616_s1, 4  ;;  %s406_s4 = int_to_ptr.vmem [resolvable:$true] %s405_s4 }
  0xd7   :  { %v360_v33 = vmax.f32 %v344_v29, 0.0  ;;  %v524_v38 = vpack.c.bf16 %v356_v25, %v355_v22  ;;  %v529_v39 = vpack.c.bf16 %v358_v27, %v357_v26  ;;  %v362_v40 = vmax.f32 %v346_v34, 0.0  ;;  %v349_v42 = vld [vmem:[#allocation2 + $0x60] sm:$0xff]  ;;  %v350_v43 = vld [vmem:[#allocation2 + $0x70] sm:$0xff]  ;;  %s617_s17 = smov 64   ;;  %s618_s18 = smov 4  }
  0xd8   :  { %v348_v37 = vld [vmem:[#allocation2 + $0x38] sm:$0xff]  ;;  %520 = vst [vmem:[#allocation6] sm:$0xff] %v519_v31   ;;  %v365_v47 = vmax.f32 %v349_v42, 0.0  ;;  %v366_v48 = vmax.f32 %v350_v43, 0.0 }
  0xd9   :  { %v351_v44 = vld [vmem:[#allocation2 + $0x78] sm:$0xff]  ;;  %v534_v45 = vpack.c.bf16 %v360_v33, %v359_v32  ;;  %v364_v46 = vmax.f32 %v348_v37, 0.0  ;;  %v352_v49 = vld [vmem:[#allocation2 + $0x28] sm:$0xff]  ;;  %556 = vst [vmem:[#allocation6 + $0x8] sm:$0xff] %v524_v38   ;;  %v539_v50 = vpack.c.bf16 %v362_v40, %v361_v35 }
  0xda   :  { %v367_v51 = vmax.f32 %v351_v44, 0.0  ;;  %v368_v52 = vmax.f32 %v352_v49, 0.0  ;;  %557 = vst [vmem:[#allocation6 + $0x10] sm:$0xff] %v529_v39   ;;  %v549_v54 = vpack.c.bf16 %v366_v48, %v365_v47 }
  0xdb   :  { %v544_v53 = vpack.c.bf16 %v364_v46, %v363_v41  ;;  %558 = vst [vmem:[#allocation6 + $0x18] sm:$0xff] %v534_v45  }
  0xdc   :  { %v554_v55 = vpack.c.bf16 %v368_v52, %v367_v51  ;;  %559 = vst [vmem:[#allocation6 + $0x20] sm:$0xff] %v539_v50  }
  0xdd   :  { %560 = vst [vmem:[#allocation6 + $0x28] sm:$0xff] %v544_v53  }
  0xde   :  { %561 = vst [vmem:[#allocation6 + $0x30] sm:$0xff] %v549_v54  }
  0xdf   :  { %562 = vst [vmem:[#allocation6 + $0x38] sm:$0xff] %v554_v55  }
  0xe0   :  { %413 = dma.vmem_to_hbm [thread:$0]  %s406_s4, 1024, %s408_s16, [#allocation7], %s617_s17, %s617_s17, %s618_s18  }
  0xe1   :  { %614 = dma.done.wait [#allocation7], 1024  }
  0xe2   :  { %615 = vsyncadd [#allocation7], 4294966272 }
  0xe3   :  { %418 = vsyncpa [#allocation7], 1 }

// kernel: grace_forward.5
= control target key start
LH: loop header
LB: loop body
LE: loop exit
PB: predicated region body
PF: predicated region fallthrough
CT: control target
= control target key end

     0   :  { %s712_s0 = inlined_call_operand.<no memory space> [shape: s32[1], index: 0, kind: input, shape index: {}]   ;;  %s713_s1 = inlined_call_operand.<no memory space> [shape: s32[1], index: 1, kind: input, shape index: {}]   ;;  %s714_s4 = inlined_call_operand.vmem [shape: f32[128,128], index: 4, kind: input, shape index: {}]   ;;  %s715_s5 = inlined_call_operand.vmem [shape: bf16[128,128], index: 5, kind: output, shape index: {}]   ;;  %s716_s2 = inlined_call_operand.vmem [shape: bf16[128,128], index: 2, kind: input, shape index: {}]   ;;  %s717_s3 = inlined_call_operand.vmem [shape: bf16[128,128], index: 3, kind: input, shape index: {}]  }
   0x1   :  { %p51_p0 = scmp.lt.s32.totalorder %s712_s0, 0  ;;  %s417_s22 = sshll.u32 %s712_s0, 4  ;;  %v71_v0 = vld [vmem:[%s714_s4] sm:$0xff]  ;;  %v72_v1 = vld [vmem:[%s714_s4 + $0x8] sm:$0xff]  ;;  %v73_v2 = vld [vmem:[%s714_s4 + $0x10] sm:$0xff] }
   0x2   :  { %p60_p1 = scmp.lt.s32.totalorder %s417_s22, 15  ;;  %87 = vst [vmem:[#allocation2 + $0x30] sm:$0xff] %v71_v0  ;;  %v74_v3 = vld [vmem:[%s714_s4 + $0x18] sm:$0xff]  ;;  %v75_v4 = vld [vmem:[%s714_s4 + $0x20] sm:$0xff]  ;;  %v76_v5 = vld [vmem:[%s714_s4 + $0x28] sm:$0xff]  ;;  %p420_p2 = scmp.le.s32.totalorder %s713_s1, 0 }
   0x3   :  { %s719_s0 = smov (!%p51_p0, %s712_s0), 0  ;;  %88 = vst [vmem:[#allocation2] sm:$0xff] %v72_v1  ;;  %v77_v6 = vld [vmem:[%s714_s4 + $0x30] sm:$0xff]  ;;  %v78_v7 = vld [vmem:[%s714_s4 + $0x38] sm:$0xff]  ;;  %v79_v8 = vld [vmem:[%s714_s4 + $0x40] sm:$0xff] }
   0x4   :  { %s721_s22 = smov (!%p60_p1, %s417_s22), 15  ;;  %89 = vst [vmem:[#allocation2 + $0x58] sm:$0xff] %v73_v2  ;;  %s416_s12 = sshll.u32 %s719_s0, 2  ;;  %v80_v9 = vld [vmem:[%s714_s4 + $0x48] sm:$0xff]  ;;  %v81_v10 = vld [vmem:[%s714_s4 + $0x50] sm:$0xff]  ;;  %v82_v11 = vld [vmem:[%s714_s4 + $0x58] sm:$0xff] }
   0x5   :  { %90 = vst [vmem:[#allocation2 + $0x18] sm:$0xff] %v74_v3  ;;  %s635_s17 = scalar_lea.vmem %s716_s2, %s416_s12  ;;  %s418_s18 = sshll.u32 %s721_s22, 2  ;;  %v83_v12 = vld [vmem:[%s714_s4 + $0x60] sm:$0xff]  ;;  %v84_v13 = vld [vmem:[%s714_s4 + $0x68] sm:$0xff]  ;;  %v85_v14 = vld [vmem:[%s714_s4 + $0x70] sm:$0xff] }
   0x6   :  { %91 = vst [vmem:[#allocation2 + $0x50] sm:$0xff] %v75_v4  ;;  %s643_s0 = scalar_lea.vmem %s717_s3, %s418_s18  ;;  %v86_v15 = vld [vmem:[%s714_s4 + $0x78] sm:$0xff] }
   0x7   :  { %92 = vst [vmem:[#allocation2 + $0x68] sm:$0xff] %v76_v5 }
   0x8   :  { %93 = vst [vmem:[#allocation2 + $0x8] sm:$0xff] %v77_v6 }
   0x9   :  { %94 = vst [vmem:[#allocation2 + $0x48] sm:$0xff] %v78_v7 }
   0xa   :  { %95 = vst [vmem:[#allocation2 + $0x40] sm:$0xff] %v79_v8 }
   0xb   :  { %96 = vst [vmem:[#allocation2 + $0x20] sm:$0xff] %v80_v9 }
   0xc   :  { %97 = vst [vmem:[#allocation2 + $0x10] sm:$0xff] %v81_v10 }
   0xd   :  { %98 = vst [vmem:[#allocation2 + $0x38] sm:$0xff] %v82_v11  ;;  %107 = sbr.rel (%p420_p2) target bundleno = 211 (0xd3), region = 21 }
   0xe   :  { %99 = vst [vmem:[#allocation2 + $0x60] sm:$0xff] %v83_v12 }
   0xf   :  { %100 = vst [vmem:[#allocation2 + $0x70] sm:$0xff] %v84_v13 }
  0x10   :  { %101 = vst [vmem:[#allocation2 + $0x78] sm:$0xff] %v85_v14 }
  0x11   :  { %102 = vst [vmem:[#allocation2 + $0x28] sm:$0xff] %v86_v15 }
  0x12   :  { %v500_v16 = vld [vmem:[%s643_s0 + $0x38] sm:$0xff]  ;;  %v499_v17 = vld [vmem:[%s643_s0 + $0x30] sm:$0xff]  ;;  %v498_v18 = vld [vmem:[%s643_s0 + $0x28] sm:$0xff] }
  0x13   :  { %252 = vmatpush.bf16.msra.mxu0 %v500_v16  ;;  %548 = vmatpush.bf16.msra.mxu1 %v500_v16  ;;  %v497_v19 = vld [vmem:[%s643_s0 + $0x20] sm:$0xff]  ;;  %v496_v20 = vld [vmem:[%s643_s0 + $0x18] sm:$0xff]  ;;  %v495_v21 = vld [vmem:[%s643_s0 + $0x10] sm:$0xff] }
  0x14   :  { %549 = vmatpush.bf16.msra.mxu2 %v500_v16  ;;  %550 = vmatpush.bf16.msra.mxu3 %v500_v16  ;;  %v494_v22 = vld [vmem:[%s643_s0 + $0x8] sm:$0xff]  ;;  %v493_v23 = vld [vmem:[%s643_s0] sm:$0xff]  ;;  %v487_v25 = vld [vmem:[%s635_s17 + $0x10] sm:$0xff] }
  0x15   :  { %v485_v24 = vld [vmem:[%s635_s17] sm:$0xff]  ;;  %v491_v27 = vld [vmem:[%s635_s17 + $0x30] sm:$0xff]  ;;  %v486_v28 = vld [vmem:[%s635_s17 + $0x8] sm:$0xff] }
  0x16   :  { %v489_v26 = vld [vmem:[%s635_s17 + $0x20] sm:$0xff]  ;;  %v488_v29 = vld [vmem:[%s635_s17 + $0x18] sm:$0xff]  ;;  %v490_v30 = vld [vmem:[%s635_s17 + $0x28] sm:$0xff] }
  0x17   :  { %253 = vmatpush.bf16.msra.mxu0 %v499_v17  ;;  %551 = vmatpush.bf16.msra.mxu1 %v499_v17  ;;  %v492_v31 = vld [vmem:[%s635_s17 + $0x38] sm:$0xff]  ;;  %v108_v32 = vld [vmem:[#allocation2 + $0x30] sm:$0xff]  ;;  %v116_v38 = vld [vmem:[#allocation2 + $0x40] sm:$0xff] }
  0x18   :  { %552 = vmatpush.bf16.msra.mxu2 %v499_v17  ;;  %553 = vmatpush.bf16.msra.mxu3 %v499_v17  ;;  %v112_v33 = vld [vmem:[#allocation2 + $0x50] sm:$0xff]  ;;  %v120_v39 = vld [vmem:[#allocation2 + $0x60] sm:$0xff]  ;;  %v113_v41 = vld [vmem:[#allocation2 + $0x68] sm:$0xff] }
  0x19   :  { %v109_v40 = vld [vmem:[#allocation2] sm:$0xff]  ;;  %v121_v51 = vld [vmem:[#allocation2 + $0x70] sm:$0xff]  ;;  %v110_v52 = vld [vmem:[#allocation2 + $0x58] sm:$0xff] }
  0x1a   :  { %v117_v50 = vld [vmem:[#allocation2 + $0x20] sm:$0xff]  ;;  %v114_v53 = vld [vmem:[#allocation2 + $0x8] sm:$0xff]  ;;  %v118_v62 = vld [vmem:[#allocation2 + $0x10] sm:$0xff] }
  0x1b   :  { %254 = vmatpush.bf16.msra.mxu0 %v498_v18  ;;  %554 = vmatpush.bf16.msra.mxu1 %v498_v18  ;;  %v122_v63 = vld [vmem:[#allocation2 + $0x78] sm:$0xff]  ;;  %v115_v1 = vld [vmem:[#allocation2 + $0x48] sm:$0xff] }
  0x1c   :  { %555 = vmatpush.bf16.msra.mxu2 %v498_v18  ;;  %556 = vmatpush.bf16.msra.mxu3 %v498_v18  ;;  %v111_v0 = vld [vmem:[#allocation2 + $0x18] sm:$0xff]  ;;  %v123_v11 = vld [vmem:[#allocation2 + $0x28] sm:$0xff] }
  0x1d   :  { %v119_v10 = vld [vmem:[#allocation2 + $0x38] sm:$0xff] }
  0x1f   :  { %255 = vmatpush.bf16.msra.mxu0 %v497_v19  ;;  %557 = vmatpush.bf16.msra.mxu1 %v497_v19 }
  0x20   :  { %558 = vmatpush.bf16.msra.mxu2 %v497_v19  ;;  %559 = vmatpush.bf16.msra.mxu3 %v497_v19 }
  0x23   :  { %256 = vmatpush.bf16.msra.mxu0 %v496_v20  ;;  %560 = vmatpush.bf16.msra.mxu1 %v496_v20 }
  0x24   :  { %561 = vmatpush.bf16.msra.mxu2 %v496_v20  ;;  %562 = vmatpush.bf16.msra.mxu3 %v496_v20 }
  0x27   :  { %257 = vmatpush.bf16.msra.mxu0 %v495_v21  ;;  %563 = vmatpush.bf16.msra.mxu1 %v495_v21 }
  0x28   :  { %564 = vmatpush.bf16.msra.mxu2 %v495_v21  ;;  %565 = vmatpush.bf16.msra.mxu3 %v495_v21 }
  0x2b   :  { %258 = vmatpush.bf16.msra.mxu0 %v494_v22  ;;  %566 = vmatpush.bf16.msra.mxu1 %v494_v22 }
  0x2c   :  { %567 = vmatpush.bf16.msra.mxu2 %v494_v22  ;;  %568 = vmatpush.bf16.msra.mxu3 %v494_v22 }
  0x2f   :  { %259 = vmatpush.bf16.msra.mxu0 %v493_v23  ;;  %569 = vmatpush.bf16.msra.mxu1 %v493_v23 }
  0x30   :  { %570 = vmatpush.bf16.msra.mxu2 %v493_v23  ;;  %571 = vmatpush.bf16.msra.mxu3 %v493_v23 }
  0x32   :  { %260 = vmatmul.bf16.vlgmr.msra.gmra.mxu0 %v485_v24  ;;  %270 = vmatmul.bf16.vlgmr.msra.gmra.mxu1 %v487_v25 }
  0x33   :  { %280 = vmatmul.bf16.vlgmr.msra.gmra.mxu2 %v489_v26  ;;  %290 = vmatmul.bf16.vlgmr.msra.gmra.mxu3 %v491_v27 }
  0x42   :  { %265 = vmatmul.bf16.gmra.mxu0 %v486_v28  ;;  %275 = vmatmul.bf16.gmra.mxu1 %v488_v29 }
  0x43   :  { %285 = vmatmul.bf16.gmra.mxu2 %v490_v30  ;;  %295 = vmatmul.bf16.gmra.mxu3 %v492_v31 }
  0xaf   :  { %v261_v34 = vpop.f32.mrf.mxu0  ;;  %v271_v35 = vpop.f32.mrf.mxu1 }
  0xb0   :  { %v301_v36 = vadd.f32 %v261_v34, %v108_v32  ;;  %v305_v37 = vadd.f32 %v271_v35, %v112_v33 }
  0xb2   :  { %317 = vst [vmem:[#allocation2 + $0x30] sm:$0xff] %v301_v36 }
  0xb3   :  { %321 = vst [vmem:[#allocation2 + $0x50] sm:$0xff] %v305_v37 }
  0xb6   :  { %v281_v42 = vpop.f32.mrf.mxu2  ;;  %v291_v43 = vpop.f32.mrf.mxu3 }
  0xb7   :  { %v309_v44 = vadd.f32 %v281_v42, %v116_v38  ;;  %v313_v45 = vadd.f32 %v291_v43, %v120_v39  ;;  %v263_v46 = vpop.f32.mrf.mxu0  ;;  %v273_v47 = vpop.f32.mrf.mxu1 }
  0xb8   :  { %v302_v48 = vadd.f32 %v263_v46, %v109_v40  ;;  %v306_v49 = vadd.f32 %v273_v47, %v113_v41 }
  0xb9   :  { %325 = vst [vmem:[#allocation2 + $0x40] sm:$0xff] %v309_v44 }
  0xba   :  { %329 = vst [vmem:[#allocation2 + $0x60] sm:$0xff] %v313_v45 }
  0xbb   :  { %318 = vst [vmem:[#allocation2] sm:$0xff] %v302_v48 }
  0xbc   :  { %322 = vst [vmem:[#allocation2 + $0x68] sm:$0xff] %v306_v49 }
  0xbe   :  { %v283_v54 = vpop.f32.mrf.mxu2  ;;  %v293_v55 = vpop.f32.mrf.mxu3 }
  0xbf   :  { %v310_v56 = vadd.f32 %v283_v54, %v117_v50  ;;  %v314_v57 = vadd.f32 %v293_v55, %v121_v51  ;;  %v266_v58 = vpop.f32.mrf.mxu0  ;;  %v276_v59 = vpop.f32.mrf.mxu1 }
  0xc0   :  { %v303_v60 = vadd.f32 %v266_v58, %v110_v52  ;;  %v307_v61 = vadd.f32 %v276_v59, %v114_v53 }
  0xc1   :  { %326 = vst [vmem:[#allocation2 + $0x20] sm:$0xff] %v310_v56 }
  0xc2   :  { %330 = vst [vmem:[#allocation2 + $0x70] sm:$0xff] %v314_v57 }
  0xc3   :  { %319 = vst [vmem:[#allocation2 + $0x58] sm:$0xff] %v303_v60 }
  0xc4   :  { %323 = vst [vmem:[#allocation2 + $0x8] sm:$0xff] %v307_v61 }
  0xc6   :  { %v286_v2 = vpop.f32.mrf.mxu2  ;;  %v296_v3 = vpop.f32.mrf.mxu3 }
  0xc7   :  { %v311_v4 = vadd.f32 %v286_v2, %v118_v62  ;;  %v315_v5 = vadd.f32 %v296_v3, %v122_v63  ;;  %v268_v6 = vpop.f32.mrf.mxu0  ;;  %v278_v7 = vpop.f32.mrf.mxu1 }
  0xc8   :  { %v304_v8 = vadd.f32 %v268_v6, %v111_v0  ;;  %v308_v9 = vadd.f32 %v278_v7, %v115_v1 }
  0xc9   :  { %327 = vst [vmem:[#allocation2 + $0x10] sm:$0xff] %v311_v4 }
  0xca   :  { %331 = vst [vmem:[#allocation2 + $0x78] sm:$0xff] %v315_v5 }
  0xcb   :  { %320 = vst [vmem:[#allocation2 + $0x18] sm:$0xff] %v304_v8 }
  0xcc   :  { %324 = vst [vmem:[#allocation2 + $0x48] sm:$0xff] %v308_v9 }
  0xce   :  { %v288_v12 = vpop.f32.mrf.mxu2  ;;  %v298_v13 = vpop.f32.mrf.mxu3 }
  0xcf   :  { %v312_v14 = vadd.f32 %v288_v12, %v119_v10  ;;  %v316_v15 = vadd.f32 %v298_v13, %v123_v11 }
  0xd1   :  { %328 = vst [vmem:[#allocation2 + $0x38] sm:$0xff] %v312_v14 }
  0xd2   :  { %332 = vst [vmem:[#allocation2 + $0x28] sm:$0xff] %v316_v15 }
  0xd3 PF:  { %v336_v16 = vld [vmem:[#allocation2 + $0x30] sm:$0xff]  ;;  %v337_v17 = vld [vmem:[#allocation2] sm:$0xff]  ;;  %v338_v18 = vld [vmem:[#allocation2 + $0x58] sm:$0xff] }
  0xd4   :  { %v352_v19 = vmax.f32 %v336_v16, 0.0  ;;  %v353_v20 = vmax.f32 %v337_v17, 0.0  ;;  %v339_v21 = vld [vmem:[#allocation2 + $0x18] sm:$0xff]  ;;  %v354_v22 = vmax.f32 %v338_v18, 0.0  ;;  %v340_v23 = vld [vmem:[#allocation2 + $0x50] sm:$0xff]  ;;  %v341_v24 = vld [vmem:[#allocation2 + $0x68] sm:$0xff] }
  0xd5   :  { %v355_v25 = vmax.f32 %v339_v21, 0.0  ;;  %v356_v26 = vmax.f32 %v340_v23, 0.0  ;;  %v357_v27 = vmax.f32 %v341_v24, 0.0  ;;  %v342_v28 = vld [vmem:[#allocation2 + $0x8] sm:$0xff]  ;;  %v344_v30 = vld [vmem:[#allocation2 + $0x40] sm:$0xff]  ;;  %v346_v36 = vld [vmem:[#allocation2 + $0x10] sm:$0xff] }
  0xd6   :  { %v343_v29 = vld [vmem:[#allocation2 + $0x48] sm:$0xff]  ;;  %v504_v31 = vpack.c.bf16 %v353_v20, %v352_v19  ;;  %v358_v32 = vmax.f32 %v342_v28, 0.0  ;;  %v345_v34 = vld [vmem:[#allocation2 + $0x20] sm:$0xff]  ;;  %v360_v35 = vmax.f32 %v344_v30, 0.0  ;;  %v362_v41 = vmax.f32 %v346_v36, 0.0 }
  0xd7   :  { %v359_v33 = vmax.f32 %v343_v29, 0.0  ;;  %v509_v38 = vpack.c.bf16 %v355_v25, %v354_v22  ;;  %v514_v39 = vpack.c.bf16 %v357_v27, %v356_v26  ;;  %v361_v40 = vmax.f32 %v345_v34, 0.0  ;;  %v348_v42 = vld [vmem:[#allocation2 + $0x60] sm:$0xff]  ;;  %v349_v43 = vld [vmem:[#allocation2 + $0x70] sm:$0xff] }
  0xd8   :  { %v347_v37 = vld [vmem:[#allocation2 + $0x38] sm:$0xff]  ;;  %505 = vst [vmem:[%s715_s5] sm:$0xff] %v504_v31   ;;  %v364_v47 = vmax.f32 %v348_v42, 0.0  ;;  %v365_v48 = vmax.f32 %v349_v43, 0.0 }
  0xd9   :  { %v350_v44 = vld [vmem:[#allocation2 + $0x78] sm:$0xff]  ;;  %v519_v45 = vpack.c.bf16 %v359_v33, %v358_v32  ;;  %v363_v46 = vmax.f32 %v347_v37, 0.0  ;;  %v351_v49 = vld [vmem:[#allocation2 + $0x28] sm:$0xff]  ;;  %541 = vst [vmem:[%s715_s5 + $0x8] sm:$0xff] %v509_v38   ;;  %v524_v50 = vpack.c.bf16 %v361_v40, %v360_v35 }
  0xda   :  { %v366_v51 = vmax.f32 %v350_v44, 0.0  ;;  %v367_v52 = vmax.f32 %v351_v49, 0.0  ;;  %542 = vst [vmem:[%s715_s5 + $0x10] sm:$0xff] %v514_v39   ;;  %v534_v54 = vpack.c.bf16 %v365_v48, %v364_v47 }
  0xdb   :  { %v529_v53 = vpack.c.bf16 %v363_v46, %v362_v41  ;;  %543 = vst [vmem:[%s715_s5 + $0x18] sm:$0xff] %v519_v45  }
  0xdc   :  { %v539_v55 = vpack.c.bf16 %v367_v52, %v366_v51  ;;  %544 = vst [vmem:[%s715_s5 + $0x20] sm:$0xff] %v524_v50  }
  0xdd   :  { %545 = vst [vmem:[%s715_s5 + $0x28] sm:$0xff] %v529_v53  }
  0xde   :  { %546 = vst [vmem:[%s715_s5 + $0x30] sm:$0xff] %v534_v54  }
  0xdf   :  { %547 = vst [vmem:[%s715_s5 + $0x38] sm:$0xff] %v539_v55  }

</bundles_post_ra>
